<compile_context>
chip_gen: v7x
topology: tpu7x:2x2x1
jax: 0.10.0
libtpu: 0.0.40
codegen_flags: <defaults>
</compile_context>

<pallas_src>
import jax
import jax.numpy as jnp
import numpy as np
from jax import lax
from jax.experimental import pallas as pl
from jax.experimental.pallas import tpu as pltpu


def _bigru_kernel(emb_ref, len_ref, wih_ref, whh_ref, bx_ref, bhn_ref,
                  out_ref, xg_scr):
    """One GRU direction per grid point (d = pl.program_id(0)).

    emb_ref : (T*Bp, Ep) f32   time-major embedded input, flattened over (t, b)
    len_ref : (Bp, 1)   i32    sequence lengths (0 for padded batch rows)
    wih_ref : (1, Ep, 3*Hp) f32  fused input weights  [r | z | n] for this dir
    whh_ref : (1, Hp, 3*Hp) f32  fused hidden weights [r | z | n]
    bx_ref  : (1, 1, 3*Hp) f32   [b_ir+b_hr | b_iz+b_hz | b_in]
    bhn_ref : (1, 1, Hp)   f32   b_hn (kept separate: it is scaled by r)
    out_ref : (1, Bp, Hp)  f32   final hidden state for this direction
    xg_scr  : (T*Bp, 3*Hp) f32   hoisted input projections
    """
    TB, _ = emb_ref.shape
    Bp, Hp = out_ref.shape[1], out_ref.shape[2]
    T = TB // Bp
    d = pl.program_id(0)

    # Hoisted input projection: one big MXU matmul for ALL timesteps, with the
    # input-side (and pre-summed r/z hidden-side) biases folded in.
    xg_scr[...] = (jnp.dot(emb_ref[...], wih_ref[0],
                           preferred_element_type=jnp.float32) + bx_ref[0])

    bhn = bhn_ref[0]                       # (1, Hp)
    lens = len_ref[...]                    # (Bp, 1) int32

    def step(i, h):
        # forward (d == 0): t = i ; backward (d == 1): t = T - 1 - i
        t = i + d * (T - 1 - 2 * i)
        row = pl.multiple_of(t * Bp, Bp)
        xg_t = xg_scr[pl.ds(row, Bp), :]                       # (Bp, 3*Hp)
        hg = jnp.dot(h, whh_ref[0], preferred_element_type=jnp.float32)

        r = jax.nn.sigmoid(xg_t[:, 0:Hp] + hg[:, 0:Hp])
        z = jax.nn.sigmoid(xg_t[:, Hp:2 * Hp] + hg[:, Hp:2 * Hp])
        n = jnp.tanh(xg_t[:, 2 * Hp:] + r * (hg[:, 2 * Hp:] + bhn))

        h_new = (1.0 - z) * n + z * h
        m = (t < lens).astype(jnp.float32)                     # (Bp, 1)
        return m * h_new + (1.0 - m) * h                       # freeze on pad

    h_final = lax.fori_loop(0, T, step, jnp.zeros((Bp, Hp), jnp.float32),
                            unroll=True)
    out_ref[0] = h_final


def _round_up(x, m):
    return ((x + m - 1) // m) * m


def encoder_forward(token_seq, enc_lengths, params):
    """token_seq: (B, T) int32, enc_lengths: (B,) int32 (sorted descending)."""
    emb_table = params["embedding"]                         # (V, E)
    wih, whh = params["wih"], params["whh"]                 # (2,3,E,H), (2,3,H,H)
    bih, bhh = params["bih"], params["bhh"]                 # (2,3,1,H)

    B, T = token_seq.shape
    E = emb_table.shape[1]
    H = whh.shape[-1]

    Bp = max(8, _round_up(B, 8))
    Ep = max(128, _round_up(E, 128))
    Hp = max(128, _round_up(H, 128))
    G = 3 * Hp

    # ---- glue: embedding gather + time-major layout + padding ----
    embedded = jnp.take(emb_table, token_seq, axis=0).astype(jnp.float32)  # (B,T,E)
    emb_tm = jnp.transpose(embedded, (1, 0, 2))                            # (T,B,E)
    emb_p = jnp.zeros((T, Bp, Ep), jnp.float32).at[:, :B, :E].set(emb_tm)
    emb_p = emb_p.reshape(T * Bp, Ep)                                      # (T*Bp,Ep)

    lens_p = jnp.zeros((Bp, 1), jnp.int32).at[:B, 0].set(
        enc_lengths.astype(jnp.int32))

    # ---- fuse/pad weights: (dir, in, 3*Hp) with each Hp slot = one gate ----
    def fuse(w, in_dim, in_pad):
        out = jnp.zeros((2, in_pad, G), jnp.float32)
        for g in range(3):
            out = out.at[:, :in_dim, g * Hp:g * Hp + H].set(w[:, g])
        return out

    wih_f = fuse(wih, E, Ep)                                # (2, Ep, G)
    whh_f = fuse(whh, H, Hp)                                # (2, Hp, G)

    bx = jnp.zeros((2, 1, G), jnp.float32)
    bx = bx.at[:, 0, 0 * Hp:0 * Hp + H].set(bih[:, 0, 0] + bhh[:, 0, 0])  # r
    bx = bx.at[:, 0, 1 * Hp:1 * Hp + H].set(bih[:, 1, 0] + bhh[:, 1, 0])  # z
    bx = bx.at[:, 0, 2 * Hp:2 * Hp + H].set(bih[:, 2, 0])                 # n (input)
    bhn = jnp.zeros((2, 1, Hp), jnp.float32).at[:, 0, :H].set(bhh[:, 2, 0])

    # TODO(synk): for long sequences, stream emb/xg over T-chunks (grid axis
    # marked "arbitrary") instead of holding (T*Bp, Ep) resident in VMEM.
    out = pl.pallas_call(
        _bigru_kernel,
        out_shape=jax.ShapeDtypeStruct((2, Bp, Hp), jnp.float32),
        grid=(2,),
        in_specs=[
            pl.BlockSpec((T * Bp, Ep), lambda d: (0, 0)),   # embedded input
            pl.BlockSpec((Bp, 1), lambda d: (0, 0)),        # lengths
            pl.BlockSpec((1, Ep, G), lambda d: (d, 0, 0)),  # W_ih (per dir)
            pl.BlockSpec((1, Hp, G), lambda d: (d, 0, 0)),  # W_hh (per dir)
            pl.BlockSpec((1, 1, G), lambda d: (d, 0, 0)),   # fused bias
            pl.BlockSpec((1, 1, Hp), lambda d: (d, 0, 0)),  # b_hn
        ],
        out_specs=pl.BlockSpec((1, Bp, Hp), lambda d: (d, 0, 0)),
        scratch_shapes=[pltpu.VMEM((T * Bp, G), jnp.float32)],
        compiler_params=pltpu.CompilerParams(
            dimension_semantics=("parallel",)),
    )(emb_p, lens_p, wih_f, whh_f, bx, bhn)

    hf = out[0, :B, :H]
    hb = out[1, :B, :H]
    return jnp.concatenate([hf, hb], axis=1)                # (B, 2H)


def encoder_reference(token_seq, enc_lengths, params):
    """Pure-JAX reference with the original (unfused) parameter layout."""
    emb_table = params["embedding"]
    wih, whh, bih, bhh = params["wih"], params["whh"], params["bih"], params["bhh"]
    B, T = token_seq.shape
    H = whh.shape[-1]
    embedded = jnp.take(emb_table, token_seq, axis=0)
    emb_tm = jnp.transpose(embedded, (1, 0, 2)).astype(jnp.float32)
    t_idx = jnp.arange(T, dtype=jnp.int32)[:, None]
    mask = (t_idx < enc_lengths[None, :]).astype(jnp.float32)[:, :, None]

    def run_dir(d, reverse):
        h = jnp.zeros((B, H), jnp.float32)
        order = range(T - 1, -1, -1) if reverse else range(T)
        for t in order:
            x, m = emb_tm[t], mask[t]
            r = jax.nn.sigmoid(x @ wih[d, 0] + bih[d, 0] + h @ whh[d, 0] + bhh[d, 0])
            z = jax.nn.sigmoid(x @ wih[d, 1] + bih[d, 1] + h @ whh[d, 1] + bhh[d, 1])
            n = jnp.tanh(x @ wih[d, 2] + bih[d, 2] + r * (h @ whh[d, 2] + bhh[d, 2]))
            h_new = (1.0 - z) * n + z * h
            h = m * h_new + (1.0 - m) * h
        return h

    return jnp.concatenate([run_dir(0, False), run_dir(1, True)], axis=1)


def make_params(key, input_dim, emb_dim, hidden_dim):
    k0, k1, k2, k3, k4 = jax.random.split(key, 5)
    scale = 1.0 / np.sqrt(hidden_dim)
    return {
        "embedding": jax.random.normal(k0, (input_dim, emb_dim), jnp.float32),
        # Stacked GRU weights: [direction(fwd,bwd), gate(r,z,n), in, H]
        "wih": jax.random.uniform(k1, (2, 3, emb_dim, hidden_dim), jnp.float32,
                                  -scale, scale),
        "whh": jax.random.uniform(k2, (2, 3, hidden_dim, hidden_dim), jnp.float32,
                                  -scale, scale),
        "bih": jax.random.uniform(k3, (2, 3, 1, hidden_dim), jnp.float32,
                                  -scale, scale),
        "bhh": jax.random.uniform(k4, (2, 3, 1, hidden_dim), jnp.float32,
                                  -scale, scale),
    }


if __name__ == "__main__":
    INPUT_DIM, EMB_DIM, HIDDEN_DIM = 20, 16, 32
    B, T = 2, 8

    key = jax.random.PRNGKey(0)
    kp, kt = jax.random.split(key)
    params = make_params(kp, INPUT_DIM, EMB_DIM, HIDDEN_DIM)

    token_seq = jax.random.randint(kt, (B, T), 1, INPUT_DIM, dtype=jnp.int32)
    # enforce_sorted=True in the PyTorch module => lengths sorted descending.
    enc_lengths = jnp.array([8, 5], dtype=jnp.int32)

    hidden = encoder_forward(token_seq, enc_lengths, params)
    hidden = jax.block_until_ready(hidden)

    ref = encoder_reference(token_seq, enc_lengths, params)
    np.testing.assert_allclose(np.asarray(hidden), np.asarray(ref),
                               rtol=1e-5, atol=1e-5)
    assert hidden.shape == (B, 2 * HIDDEN_DIM)
    print("KERNEL_OK")
</pallas_src>

<mosaic_0001>
module attributes {stable_mosaic.version = 11 : i64} {
  func.func @_bigru_kernel(%arg0: i32, %arg1: memref<64x128xf32, #tpu.memory_space<vmem>>, %arg2: memref<8x1xi32, #tpu.memory_space<vmem>>, %arg3: memref<1x128x384xf32, #tpu.memory_space<vmem>>, %arg4: memref<1x128x384xf32, #tpu.memory_space<vmem>>, %arg5: memref<1x1x384xf32, #tpu.memory_space<vmem>>, %arg6: memref<1x1x128xf32, #tpu.memory_space<vmem>>, %arg7: memref<1x8x128xf32, #tpu.memory_space<vmem>>, %arg8: memref<64x384xf32, #tpu.memory_space<vmem>>) attributes {dimension_semantics = [#tpu.dimension_semantics<parallel>], iteration_bounds = array<i64: 2>, scalar_prefetch = 0 : i64, scratch_operands = 1 : i64, tpu.core_type = #tpu.core_type<tc>, window_params = [{pipeline_mode = #tpu.pipeline_mode<synchronous>, transform_indices = @transform_0, window_bounds = array<i64: 64, 128>}, {pipeline_mode = #tpu.pipeline_mode<synchronous>, transform_indices = @transform_1, window_bounds = array<i64: 8, 1>}, {transform_indices = @transform_2, window_bounds = array<i64: 1, 128, 384>}, {transform_indices = @transform_3, window_bounds = array<i64: 1, 128, 384>}, {transform_indices = @transform_4, window_bounds = array<i64: 1, 1, 384>}, {transform_indices = @transform_5, window_bounds = array<i64: 1, 1, 128>}, {transform_indices = @transform_6, window_bounds = array<i64: 1, 8, 128>}]} {
    %c0 = arith.constant 0 : index
    %c0_0 = arith.constant 0 : index
    %0 = vector.load %arg1[%c0, %c0_0] : memref<64x128xf32, #tpu.memory_space<vmem>>, vector<64x128xf32>
    %c0_1 = arith.constant 0 : index
    %c0_2 = arith.constant 0 : index
    %c0_3 = arith.constant 0 : index
    %1 = vector.load %arg3[%c0_1, %c0_2, %c0_3] : memref<1x128x384xf32, #tpu.memory_space<vmem>>, vector<1x128x384xf32>
    %2 = vector.shape_cast %1 : vector<1x128x384xf32> to vector<128x384xf32>
    %cst = arith.constant dense<0.000000e+00> : vector<64x384xf32>
    %3 = tpu.matmul %0, %2, %cst {dimension_numbers = #tpu.dot_dimension_numbers<[1], [0], [0], [1], [0, 0, 1, 1], [], []>} : vector<64x128xf32>, vector<128x384xf32>, vector<64x384xf32> -> vector<64x384xf32>
    %c0_4 = arith.constant 0 : index
    %c0_5 = arith.constant 0 : index
    %c0_6 = arith.constant 0 : index
    %4 = vector.load %arg5[%c0_4, %c0_5, %c0_6] : memref<1x1x384xf32, #tpu.memory_space<vmem>>, vector<1x1x384xf32>
    %5 = vector.shape_cast %4 : vector<1x1x384xf32> to vector<1x384xf32>
    %6 = vector.broadcast %5 : vector<1x384xf32> to vector<64x384xf32>
    %7 = arith.addf %3, %6 : vector<64x384xf32>
    %c0_7 = arith.constant 0 : index
    %c0_8 = arith.constant 0 : index
    %8 = vector.load %arg8[%c0_7, %c0_8] : memref<64x384xf32, #tpu.memory_space<vmem>>, vector<64x384xf32>
    tpu.vector_store %arg8[%c0_7, %c0_8], %7 {strides = array<i32>} : memref<64x384xf32, #tpu.memory_space<vmem>>, vector<64x384xf32>,
    %c0_9 = arith.constant 0 : index
    %c0_10 = arith.constant 0 : index
    %c0_11 = arith.constant 0 : index
    %9 = vector.load %arg6[%c0_9, %c0_10, %c0_11] : memref<1x1x128xf32, #tpu.memory_space<vmem>>, vector<1x1x128xf32>
    %10 = vector.shape_cast %9 : vector<1x1x128xf32> to vector<1x128xf32>
    %c0_12 = arith.constant 0 : index
    %c0_13 = arith.constant 0 : index
    %11 = vector.load %arg2[%c0_12, %c0_13] : memref<8x1xi32, #tpu.memory_space<vmem>>, vector<8x1xi32>
    %cst_14 = arith.constant 0.000000e+00 : f32
    %12 = vector.broadcast %cst_14 : f32 to vector<8x128xf32>
    %c0_i32 = arith.constant 0 : i32
    %c2_i32 = arith.constant 2 : i32
    %13 = arith.muli %c2_i32, %c0_i32 : i32
    %c7_i32 = arith.constant 7 : i32
    %14 = arith.subi %c7_i32, %13 : i32
    %15 = arith.muli %arg0, %14 : i32
    %16 = arith.addi %c0_i32, %15 : i32
    %c8_i32 = arith.constant 8 : i32
    %17 = arith.muli %16, %c8_i32 : i32
    %18 = tpu.assume_multiple %17, 8 : i32
    %19 = arith.index_cast %18 : i32 to index
    %c0_15 = arith.constant 0 : index
    %20 = vector.load %arg8[%19, %c0_15] : memref<64x384xf32, #tpu.memory_space<vmem>>, vector<8x384xf32>
    %c0_16 = arith.constant 0 : index
    %c0_17 = arith.constant 0 : index
    %c0_18 = arith.constant 0 : index
    %21 = vector.load %arg4[%c0_16, %c0_17, %c0_18] : memref<1x128x384xf32, #tpu.memory_space<vmem>>, vector<1x128x384xf32>
    %22 = vector.shape_cast %21 : vector<1x128x384xf32> to vector<128x384xf32>
    %cst_19 = arith.constant dense<0.000000e+00> : vector<8x384xf32>
    %23 = tpu.matmul %12, %22, %cst_19 {dimension_numbers = #tpu.dot_dimension_numbers<[1], [0], [0], [1], [0, 0, 1, 1], [], []>} : vector<8x128xf32>, vector<128x384xf32>, vector<8x384xf32> -> vector<8x384xf32>
    %24 = vector.extract_strided_slice %20 {offsets = [0, 0], sizes = [8, 128], strides = [1, 1]} : vector<8x384xf32> to vector<8x128xf32>
    %25 = vector.extract_strided_slice %23 {offsets = [0, 0], sizes = [8, 128], strides = [1, 1]} : vector<8x384xf32> to vector<8x128xf32>
    %26 = arith.addf %24, %25 : vector<8x128xf32>
    %27 = arith.negf %26 : vector<8x128xf32>
    %28 = math.exp %27 : vector<8x128xf32>
    %cst_20 = arith.constant 1.000000e+00 : f32
    %29 = vector.broadcast %cst_20 : f32 to vector<8x128xf32>
    %30 = arith.addf %29, %28 : vector<8x128xf32>
    %31 = arith.divf %29, %30 : vector<8x128xf32>
    %32 = vector.extract_strided_slice %20 {offsets = [0, 128], sizes = [8, 128], strides = [1, 1]} : vector<8x384xf32> to vector<8x128xf32>
    %33 = vector.extract_strided_slice %23 {offsets = [0, 128], sizes = [8, 128], strides = [1, 1]} : vector<8x384xf32> to vector<8x128xf32>
    %34 = arith.addf %32, %33 : vector<8x128xf32>
    %35 = arith.negf %34 : vector<8x128xf32>
    %36 = math.exp %35 : vector<8x128xf32>
    %cst_21 = arith.constant 1.000000e+00 : f32
    %37 = vector.broadcast %cst_21 : f32 to vector<8x128xf32>
    %38 = arith.addf %37, %36 : vector<8x128xf32>
    %39 = arith.divf %37, %38 : vector<8x128xf32>
    %40 = vector.extract_strided_slice %20 {offsets = [0, 256], sizes = [8, 128], strides = [1, 1]} : vector<8x384xf32> to vector<8x128xf32>
    %41 = vector.extract_strided_slice %23 {offsets = [0, 256], sizes = [8, 128], strides = [1, 1]} : vector<8x384xf32> to vector<8x128xf32>
    %42 = vector.broadcast %10 : vector<1x128xf32> to vector<8x128xf32>
    %43 = arith.addf %41, %42 : vector<8x128xf32>
    %44 = arith.mulf %31, %43 : vector<8x128xf32>
    %45 = arith.addf %40, %44 : vector<8x128xf32>
    %46 = math.tanh %45 : vector<8x128xf32>
    %cst_22 = arith.constant 1.000000e+00 : f32
    %47 = vector.broadcast %cst_22 : f32 to vector<8x128xf32>
    %48 = arith.subf %47, %39 : vector<8x128xf32>
    %49 = arith.mulf %48, %46 : vector<8x128xf32>
    %50 = arith.mulf %39, %12 : vector<8x128xf32>
    %51 = arith.addf %49, %50 : vector<8x128xf32>
    %52 = vector.broadcast %16 : i32 to vector<8x1xi32>
    %53 = arith.cmpi slt, %52, %11 : vector<8x1xi32>
    %54 = arith.extui %53 : vector<8x1xi1> to vector<8x1xi32>
    %55 = arith.sitofp %54 : vector<8x1xi32> to vector<8x1xf32>
    %56 = vector.broadcast %55 : vector<8x1xf32> to vector<8x128xf32>
    %57 = arith.mulf %56, %51 : vector<8x128xf32>
    %cst_23 = arith.constant 1.000000e+00 : f32
    %58 = vector.broadcast %cst_23 : f32 to vector<8x1xf32>
    %59 = arith.subf %58, %55 : vector<8x1xf32>
    %60 = vector.broadcast %59 : vector<8x1xf32> to vector<8x128xf32>
    %61 = arith.mulf %60, %12 : vector<8x128xf32>
    %62 = arith.addf %57, %61 : vector<8x128xf32>
    %c1_i32 = arith.constant 1 : i32
    %c2_i32_24 = arith.constant 2 : i32
    %63 = arith.muli %c2_i32_24, %c1_i32 : i32
    %c7_i32_25 = arith.constant 7 : i32
    %64 = arith.subi %c7_i32_25, %63 : i32
    %65 = arith.muli %arg0, %64 : i32
    %66 = arith.addi %c1_i32, %65 : i32
    %c8_i32_26 = arith.constant 8 : i32
    %67 = arith.muli %66, %c8_i32_26 : i32
    %68 = tpu.assume_multiple %67, 8 : i32
    %69 = arith.index_cast %68 : i32 to index
    %c0_27 = arith.constant 0 : index
    %70 = vector.load %arg8[%69, %c0_27] : memref<64x384xf32, #tpu.memory_space<vmem>>, vector<8x384xf32>
    %c0_28 = arith.constant 0 : index
    %c0_29 = arith.constant 0 : index
    %c0_30 = arith.constant 0 : index
    %71 = vector.load %arg4[%c0_28, %c0_29, %c0_30] : memref<1x128x384xf32, #tpu.memory_space<vmem>>, vector<1x128x384xf32>
    %72 = vector.shape_cast %71 : vector<1x128x384xf32> to vector<128x384xf32>
    %cst_31 = arith.constant dense<0.000000e+00> : vector<8x384xf32>
    %73 = tpu.matmul %62, %72, %cst_31 {dimension_numbers = #tpu.dot_dimension_numbers<[1], [0], [0], [1], [0, 0, 1, 1], [], []>} : vector<8x128xf32>, vector<128x384xf32>, vector<8x384xf32> -> vector<8x384xf32>
    %74 = vector.extract_strided_slice %70 {offsets = [0, 0], sizes = [8, 128], strides = [1, 1]} : vector<8x384xf32> to vector<8x128xf32>
    %75 = vector.extract_strided_slice %73 {offsets = [0, 0], sizes = [8, 128], strides = [1, 1]} : vector<8x384xf32> to vector<8x128xf32>
    %76 = arith.addf %74, %75 : vector<8x128xf32>
    %77 = arith.negf %76 : vector<8x128xf32>
    %78 = math.exp %77 : vector<8x128xf32>
    %cst_32 = arith.constant 1.000000e+00 : f32
    %79 = vector.broadcast %cst_32 : f32 to vector<8x128xf32>
    %80 = arith.addf %79, %78 : vector<8x128xf32>
    %81 = arith.divf %79, %80 : vector<8x128xf32>
    %82 = vector.extract_strided_slice %70 {offsets = [0, 128], sizes = [8, 128], strides = [1, 1]} : vector<8x384xf32> to vector<8x128xf32>
    %83 = vector.extract_strided_slice %73 {offsets = [0, 128], sizes = [8, 128], strides = [1, 1]} : vector<8x384xf32> to vector<8x128xf32>
    %84 = arith.addf %82, %83 : vector<8x128xf32>
    %85 = arith.negf %84 : vector<8x128xf32>
    %86 = math.exp %85 : vector<8x128xf32>
    %cst_33 = arith.constant 1.000000e+00 : f32
    %87 = vector.broadcast %cst_33 : f32 to vector<8x128xf32>
    %88 = arith.addf %87, %86 : vector<8x128xf32>
    %89 = arith.divf %87, %88 : vector<8x128xf32>
    %90 = vector.extract_strided_slice %70 {offsets = [0, 256], sizes = [8, 128], strides = [1, 1]} : vector<8x384xf32> to vector<8x128xf32>
    %91 = vector.extract_strided_slice %73 {offsets = [0, 256], sizes = [8, 128], strides = [1, 1]} : vector<8x384xf32> to vector<8x128xf32>
    %92 = vector.broadcast %10 : vector<1x128xf32> to vector<8x128xf32>
    %93 = arith.addf %91, %92 : vector<8x128xf32>
    %94 = arith.mulf %81, %93 : vector<8x128xf32>
    %95 = arith.addf %90, %94 : vector<8x128xf32>
    %96 = math.tanh %95 : vector<8x128xf32>
    %cst_34 = arith.constant 1.000000e+00 : f32
    %97 = vector.broadcast %cst_34 : f32 to vector<8x128xf32>
    %98 = arith.subf %97, %89 : vector<8x128xf32>
    %99 = arith.mulf %98, %96 : vector<8x128xf32>
    %100 = arith.mulf %89, %62 : vector<8x128xf32>
    %101 = arith.addf %99, %100 : vector<8x128xf32>
    %102 = vector.broadcast %66 : i32 to vector<8x1xi32>
    %103 = arith.cmpi slt, %102, %11 : vector<8x1xi32>
    %104 = arith.extui %103 : vector<8x1xi1> to vector<8x1xi32>
    %105 = arith.sitofp %104 : vector<8x1xi32> to vector<8x1xf32>
    %106 = vector.broadcast %105 : vector<8x1xf32> to vector<8x128xf32>
    %107 = arith.mulf %106, %101 : vector<8x128xf32>
    %cst_35 = arith.constant 1.000000e+00 : f32
    %108 = vector.broadcast %cst_35 : f32 to vector<8x1xf32>
    %109 = arith.subf %108, %105 : vector<8x1xf32>
    %110 = vector.broadcast %109 : vector<8x1xf32> to vector<8x128xf32>
    %111 = arith.mulf %110, %62 : vector<8x128xf32>
    %112 = arith.addf %107, %111 : vector<8x128xf32>
    %c2_i32_36 = arith.constant 2 : i32
    %c2_i32_37 = arith.constant 2 : i32
    %113 = arith.muli %c2_i32_37, %c2_i32_36 : i32
    %c7_i32_38 = arith.constant 7 : i32
    %114 = arith.subi %c7_i32_38, %113 : i32
    %115 = arith.muli %arg0, %114 : i32
    %116 = arith.addi %c2_i32_36, %115 : i32
    %c8_i32_39 = arith.constant 8 : i32
    %117 = arith.muli %116, %c8_i32_39 : i32
    %118 = tpu.assume_multiple %117, 8 : i32
    %119 = arith.index_cast %118 : i32 to index
    %c0_40 = arith.constant 0 : index
    %120 = vector.load %arg8[%119, %c0_40] : memref<64x384xf32, #tpu.memory_space<vmem>>, vector<8x384xf32>
    %c0_41 = arith.constant 0 : index
    %c0_42 = arith.constant 0 : index
    %c0_43 = arith.constant 0 : index
    %121 = vector.load %arg4[%c0_41, %c0_42, %c0_43] : memref<1x128x384xf32, #tpu.memory_space<vmem>>, vector<1x128x384xf32>
    %122 = vector.shape_cast %121 : vector<1x128x384xf32> to vector<128x384xf32>
    %cst_44 = arith.constant dense<0.000000e+00> : vector<8x384xf32>
    %123 = tpu.matmul %112, %122, %cst_44 {dimension_numbers = #tpu.dot_dimension_numbers<[1], [0], [0], [1], [0, 0, 1, 1], [], []>} : vector<8x128xf32>, vector<128x384xf32>, vector<8x384xf32> -> vector<8x384xf32>
    %124 = vector.extract_strided_slice %120 {offsets = [0, 0], sizes = [8, 128], strides = [1, 1]} : vector<8x384xf32> to vector<8x128xf32>
    %125 = vector.extract_strided_slice %123 {offsets = [0, 0], sizes = [8, 128], strides = [1, 1]} : vector<8x384xf32> to vector<8x128xf32>
    %126 = arith.addf %124, %125 : vector<8x128xf32>
    %127 = arith.negf %126 : vector<8x128xf32>
    %128 = math.exp %127 : vector<8x128xf32>
    %cst_45 = arith.constant 1.000000e+00 : f32
    %129 = vector.broadcast %cst_45 : f32 to vector<8x128xf32>
    %130 = arith.addf %129, %128 : vector<8x128xf32>
    %131 = arith.divf %129, %130 : vector<8x128xf32>
    %132 = vector.extract_strided_slice %120 {offsets = [0, 128], sizes = [8, 128], strides = [1, 1]} : vector<8x384xf32> to vector<8x128xf32>
    %133 = vector.extract_strided_slice %123 {offsets = [0, 128], sizes = [8, 128], strides = [1, 1]} : vector<8x384xf32> to vector<8x128xf32>
    %134 = arith.addf %132, %133 : vector<8x128xf32>
    %135 = arith.negf %134 : vector<8x128xf32>
    %136 = math.exp %135 : vector<8x128xf32>
    %cst_46 = arith.constant 1.000000e+00 : f32
    %137 = vector.broadcast %cst_46 : f32 to vector<8x128xf32>
    %138 = arith.addf %137, %136 : vector<8x128xf32>
    %139 = arith.divf %137, %138 : vector<8x128xf32>
    %140 = vector.extract_strided_slice %120 {offsets = [0, 256], sizes = [8, 128], strides = [1, 1]} : vector<8x384xf32> to vector<8x128xf32>
    %141 = vector.extract_strided_slice %123 {offsets = [0, 256], sizes = [8, 128], strides = [1, 1]} : vector<8x384xf32> to vector<8x128xf32>
    %142 = vector.broadcast %10 : vector<1x128xf32> to vector<8x128xf32>
    %143 = arith.addf %141, %142 : vector<8x128xf32>
    %144 = arith.mulf %131, %143 : vector<8x128xf32>
    %145 = arith.addf %140, %144 : vector<8x128xf32>
    %146 = math.tanh %145 : vector<8x128xf32>
    %cst_47 = arith.constant 1.000000e+00 : f32
    %147 = vector.broadcast %cst_47 : f32 to vector<8x128xf32>
    %148 = arith.subf %147, %139 : vector<8x128xf32>
    %149 = arith.mulf %148, %146 : vector<8x128xf32>
    %150 = arith.mulf %139, %112 : vector<8x128xf32>
    %151 = arith.addf %149, %150 : vector<8x128xf32>
    %152 = vector.broadcast %116 : i32 to vector<8x1xi32>
    %153 = arith.cmpi slt, %152, %11 : vector<8x1xi32>
    %154 = arith.extui %153 : vector<8x1xi1> to vector<8x1xi32>
    %155 = arith.sitofp %154 : vector<8x1xi32> to vector<8x1xf32>
    %156 = vector.broadcast %155 : vector<8x1xf32> to vector<8x128xf32>
    %157 = arith.mulf %156, %151 : vector<8x128xf32>
    %cst_48 = arith.constant 1.000000e+00 : f32
    %158 = vector.broadcast %cst_48 : f32 to vector<8x1xf32>
    %159 = arith.subf %158, %155 : vector<8x1xf32>
    %160 = vector.broadcast %159 : vector<8x1xf32> to vector<8x128xf32>
    %161 = arith.mulf %160, %112 : vector<8x128xf32>
    %162 = arith.addf %157, %161 : vector<8x128xf32>
    %c3_i32 = arith.constant 3 : i32
    %c2_i32_49 = arith.constant 2 : i32
    %163 = arith.muli %c2_i32_49, %c3_i32 : i32
    %c7_i32_50 = arith.constant 7 : i32
    %164 = arith.subi %c7_i32_50, %163 : i32
    %165 = arith.muli %arg0, %164 : i32
    %166 = arith.addi %c3_i32, %165 : i32
    %c8_i32_51 = arith.constant 8 : i32
    %167 = arith.muli %166, %c8_i32_51 : i32
    %168 = tpu.assume_multiple %167, 8 : i32
    %169 = arith.index_cast %168 : i32 to index
    %c0_52 = arith.constant 0 : index
    %170 = vector.load %arg8[%169, %c0_52] : memref<64x384xf32, #tpu.memory_space<vmem>>, vector<8x384xf32>
    %c0_53 = arith.constant 0 : index
    %c0_54 = arith.constant 0 : index
    %c0_55 = arith.constant 0 : index
    %171 = vector.load %arg4[%c0_53, %c0_54, %c0_55] : memref<1x128x384xf32, #tpu.memory_space<vmem>>, vector<1x128x384xf32>
    %172 = vector.shape_cast %171 : vector<1x128x384xf32> to vector<128x384xf32>
    %cst_56 = arith.constant dense<0.000000e+00> : vector<8x384xf32>
    %173 = tpu.matmul %162, %172, %cst_56 {dimension_numbers = #tpu.dot_dimension_numbers<[1], [0], [0], [1], [0, 0, 1, 1], [], []>} : vector<8x128xf32>, vector<128x384xf32>, vector<8x384xf32> -> vector<8x384xf32>
    %174 = vector.extract_strided_slice %170 {offsets = [0, 0], sizes = [8, 128], strides = [1, 1]} : vector<8x384xf32> to vector<8x128xf32>
    %175 = vector.extract_strided_slice %173 {offsets = [0, 0], sizes = [8, 128], strides = [1, 1]} : vector<8x384xf32> to vector<8x128xf32>
    %176 = arith.addf %174, %175 : vector<8x128xf32>
    %177 = arith.negf %176 : vector<8x128xf32>
    %178 = math.exp %177 : vector<8x128xf32>
    %cst_57 = arith.constant 1.000000e+00 : f32
    %179 = vector.broadcast %cst_57 : f32 to vector<8x128xf32>
    %180 = arith.addf %179, %178 : vector<8x128xf32>
    %181 = arith.divf %179, %180 : vector<8x128xf32>
    %182 = vector.extract_strided_slice %170 {offsets = [0, 128], sizes = [8, 128], strides = [1, 1]} : vector<8x384xf32> to vector<8x128xf32>
    %183 = vector.extract_strided_slice %173 {offsets = [0, 128], sizes = [8, 128], strides = [1, 1]} : vector<8x384xf32> to vector<8x128xf32>
    %184 = arith.addf %182, %183 : vector<8x128xf32>
    %185 = arith.negf %184 : vector<8x128xf32>
    %186 = math.exp %185 : vector<8x128xf32>
    %cst_58 = arith.constant 1.000000e+00 : f32
    %187 = vector.broadcast %cst_58 : f32 to vector<8x128xf32>
    %188 = arith.addf %187, %186 : vector<8x128xf32>
    %189 = arith.divf %187, %188 : vector<8x128xf32>
    %190 = vector.extract_strided_slice %170 {offsets = [0, 256], sizes = [8, 128], strides = [1, 1]} : vector<8x384xf32> to vector<8x128xf32>
    %191 = vector.extract_strided_slice %173 {offsets = [0, 256], sizes = [8, 128], strides = [1, 1]} : vector<8x384xf32> to vector<8x128xf32>
    %192 = vector.broadcast %10 : vector<1x128xf32> to vector<8x128xf32>
    %193 = arith.addf %191, %192 : vector<8x128xf32>
    %194 = arith.mulf %181, %193 : vector<8x128xf32>
    %195 = arith.addf %190, %194 : vector<8x128xf32>
    %196 = math.tanh %195 : vector<8x128xf32>
    %cst_59 = arith.constant 1.000000e+00 : f32
    %197 = vector.broadcast %cst_59 : f32 to vector<8x128xf32>
    %198 = arith.subf %197, %189 : vector<8x128xf32>
    %199 = arith.mulf %198, %196 : vector<8x128xf32>
    %200 = arith.mulf %189, %162 : vector<8x128xf32>
    %201 = arith.addf %199, %200 : vector<8x128xf32>
    %202 = vector.broadcast %166 : i32 to vector<8x1xi32>
    %203 = arith.cmpi slt, %202, %11 : vector<8x1xi32>
    %204 = arith.extui %203 : vector<8x1xi1> to vector<8x1xi32>
    %205 = arith.sitofp %204 : vector<8x1xi32> to vector<8x1xf32>
    %206 = vector.broadcast %205 : vector<8x1xf32> to vector<8x128xf32>
    %207 = arith.mulf %206, %201 : vector<8x128xf32>
    %cst_60 = arith.constant 1.000000e+00 : f32
    %208 = vector.broadcast %cst_60 : f32 to vector<8x1xf32>
    %209 = arith.subf %208, %205 : vector<8x1xf32>
    %210 = vector.broadcast %209 : vector<8x1xf32> to vector<8x128xf32>
    %211 = arith.mulf %210, %162 : vector<8x128xf32>
    %212 = arith.addf %207, %211 : vector<8x128xf32>
    %c4_i32 = arith.constant 4 : i32
    %c2_i32_61 = arith.constant 2 : i32
    %213 = arith.muli %c2_i32_61, %c4_i32 : i32
    %c7_i32_62 = arith.constant 7 : i32
    %214 = arith.subi %c7_i32_62, %213 : i32
    %215 = arith.muli %arg0, %214 : i32
    %216 = arith.addi %c4_i32, %215 : i32
    %c8_i32_63 = arith.constant 8 : i32
    %217 = arith.muli %216, %c8_i32_63 : i32
    %218 = tpu.assume_multiple %217, 8 : i32
    %219 = arith.index_cast %218 : i32 to index
    %c0_64 = arith.constant 0 : index
    %220 = vector.load %arg8[%219, %c0_64] : memref<64x384xf32, #tpu.memory_space<vmem>>, vector<8x384xf32>
    %c0_65 = arith.constant 0 : index
    %c0_66 = arith.constant 0 : index
    %c0_67 = arith.constant 0 : index
    %221 = vector.load %arg4[%c0_65, %c0_66, %c0_67] : memref<1x128x384xf32, #tpu.memory_space<vmem>>, vector<1x128x384xf32>
    %222 = vector.shape_cast %221 : vector<1x128x384xf32> to vector<128x384xf32>
    %cst_68 = arith.constant dense<0.000000e+00> : vector<8x384xf32>
    %223 = tpu.matmul %212, %222, %cst_68 {dimension_numbers = #tpu.dot_dimension_numbers<[1], [0], [0], [1], [0, 0, 1, 1], [], []>} : vector<8x128xf32>, vector<128x384xf32>, vector<8x384xf32> -> vector<8x384xf32>
    %224 = vector.extract_strided_slice %220 {offsets = [0, 0], sizes = [8, 128], strides = [1, 1]} : vector<8x384xf32> to vector<8x128xf32>
    %225 = vector.extract_strided_slice %223 {offsets = [0, 0], sizes = [8, 128], strides = [1, 1]} : vector<8x384xf32> to vector<8x128xf32>
    %226 = arith.addf %224, %225 : vector<8x128xf32>
    %227 = arith.negf %226 : vector<8x128xf32>
    %228 = math.exp %227 : vector<8x128xf32>
    %cst_69 = arith.constant 1.000000e+00 : f32
    %229 = vector.broadcast %cst_69 : f32 to vector<8x128xf32>
    %230 = arith.addf %229, %228 : vector<8x128xf32>
    %231 = arith.divf %229, %230 : vector<8x128xf32>
    %232 = vector.extract_strided_slice %220 {offsets = [0, 128], sizes = [8, 128], strides = [1, 1]} : vector<8x384xf32> to vector<8x128xf32>
    %233 = vector.extract_strided_slice %223 {offsets = [0, 128], sizes = [8, 128], strides = [1, 1]} : vector<8x384xf32> to vector<8x128xf32>
    %234 = arith.addf %232, %233 : vector<8x128xf32>
    %235 = arith.negf %234 : vector<8x128xf32>
    %236 = math.exp %235 : vector<8x128xf32>
    %cst_70 = arith.constant 1.000000e+00 : f32
    %237 = vector.broadcast %cst_70 : f32 to vector<8x128xf32>
    %238 = arith.addf %237, %236 : vector<8x128xf32>
    %239 = arith.divf %237, %238 : vector<8x128xf32>
    %240 = vector.extract_strided_slice %220 {offsets = [0, 256], sizes = [8, 128], strides = [1, 1]} : vector<8x384xf32> to vector<8x128xf32>
    %241 = vector.extract_strided_slice %223 {offsets = [0, 256], sizes = [8, 128], strides = [1, 1]} : vector<8x384xf32> to vector<8x128xf32>
    %242 = vector.broadcast %10 : vector<1x128xf32> to vector<8x128xf32>
    %243 = arith.addf %241, %242 : vector<8x128xf32>
    %244 = arith.mulf %231, %243 : vector<8x128xf32>
    %245 = arith.addf %240, %244 : vector<8x128xf32>
    %246 = math.tanh %245 : vector<8x128xf32>
    %cst_71 = arith.constant 1.000000e+00 : f32
    %247 = vector.broadcast %cst_71 : f32 to vector<8x128xf32>
    %248 = arith.subf %247, %239 : vector<8x128xf32>
    %249 = arith.mulf %248, %246 : vector<8x128xf32>
    %250 = arith.mulf %239, %212 : vector<8x128xf32>
    %251 = arith.addf %249, %250 : vector<8x128xf32>
    %252 = vector.broadcast %216 : i32 to vector<8x1xi32>
    %253 = arith.cmpi slt, %252, %11 : vector<8x1xi32>
    %254 = arith.extui %253 : vector<8x1xi1> to vector<8x1xi32>
    %255 = arith.sitofp %254 : vector<8x1xi32> to vector<8x1xf32>
    %256 = vector.broadcast %255 : vector<8x1xf32> to vector<8x128xf32>
    %257 = arith.mulf %256, %251 : vector<8x128xf32>
    %cst_72 = arith.constant 1.000000e+00 : f32
    %258 = vector.broadcast %cst_72 : f32 to vector<8x1xf32>
    %259 = arith.subf %258, %255 : vector<8x1xf32>
    %260 = vector.broadcast %259 : vector<8x1xf32> to vector<8x128xf32>
    %261 = arith.mulf %260, %212 : vector<8x128xf32>
    %262 = arith.addf %257, %261 : vector<8x128xf32>
    %c5_i32 = arith.constant 5 : i32
    %c2_i32_73 = arith.constant 2 : i32
    %263 = arith.muli %c2_i32_73, %c5_i32 : i32
    %c7_i32_74 = arith.constant 7 : i32
    %264 = arith.subi %c7_i32_74, %263 : i32
    %265 = arith.muli %arg0, %264 : i32
    %266 = arith.addi %c5_i32, %265 : i32
    %c8_i32_75 = arith.constant 8 : i32
    %267 = arith.muli %266, %c8_i32_75 : i32
    %268 = tpu.assume_multiple %267, 8 : i32
    %269 = arith.index_cast %268 : i32 to index
    %c0_76 = arith.constant 0 : index
    %270 = vector.load %arg8[%269, %c0_76] : memref<64x384xf32, #tpu.memory_space<vmem>>, vector<8x384xf32>
    %c0_77 = arith.constant 0 : index
    %c0_78 = arith.constant 0 : index
    %c0_79 = arith.constant 0 : index
    %271 = vector.load %arg4[%c0_77, %c0_78, %c0_79] : memref<1x128x384xf32, #tpu.memory_space<vmem>>, vector<1x128x384xf32>
    %272 = vector.shape_cast %271 : vector<1x128x384xf32> to vector<128x384xf32>
    %cst_80 = arith.constant dense<0.000000e+00> : vector<8x384xf32>
    %273 = tpu.matmul %262, %272, %cst_80 {dimension_numbers = #tpu.dot_dimension_numbers<[1], [0], [0], [1], [0, 0, 1, 1], [], []>} : vector<8x128xf32>, vector<128x384xf32>, vector<8x384xf32> -> vector<8x384xf32>
    %274 = vector.extract_strided_slice %270 {offsets = [0, 0], sizes = [8, 128], strides = [1, 1]} : vector<8x384xf32> to vector<8x128xf32>
    %275 = vector.extract_strided_slice %273 {offsets = [0, 0], sizes = [8, 128], strides = [1, 1]} : vector<8x384xf32> to vector<8x128xf32>
    %276 = arith.addf %274, %275 : vector<8x128xf32>
    %277 = arith.negf %276 : vector<8x128xf32>
    %278 = math.exp %277 : vector<8x128xf32>
    %cst_81 = arith.constant 1.000000e+00 : f32
    %279 = vector.broadcast %cst_81 : f32 to vector<8x128xf32>
    %280 = arith.addf %279, %278 : vector<8x128xf32>
    %281 = arith.divf %279, %280 : vector<8x128xf32>
    %282 = vector.extract_strided_slice %270 {offsets = [0, 128], sizes = [8, 128], strides = [1, 1]} : vector<8x384xf32> to vector<8x128xf32>
    %283 = vector.extract_strided_slice %273 {offsets = [0, 128], sizes = [8, 128], strides = [1, 1]} : vector<8x384xf32> to vector<8x128xf32>
    %284 = arith.addf %282, %283 : vector<8x128xf32>
    %285 = arith.negf %284 : vector<8x128xf32>
    %286 = math.exp %285 : vector<8x128xf32>
    %cst_82 = arith.constant 1.000000e+00 : f32
    %287 = vector.broadcast %cst_82 : f32 to vector<8x128xf32>
    %288 = arith.addf %287, %286 : vector<8x128xf32>
    %289 = arith.divf %287, %288 : vector<8x128xf32>
    %290 = vector.extract_strided_slice %270 {offsets = [0, 256], sizes = [8, 128], strides = [1, 1]} : vector<8x384xf32> to vector<8x128xf32>
    %291 = vector.extract_strided_slice %273 {offsets = [0, 256], sizes = [8, 128], strides = [1, 1]} : vector<8x384xf32> to vector<8x128xf32>
    %292 = vector.broadcast %10 : vector<1x128xf32> to vector<8x128xf32>
    %293 = arith.addf %291, %292 : vector<8x128xf32>
    %294 = arith.mulf %281, %293 : vector<8x128xf32>
    %295 = arith.addf %290, %294 : vector<8x128xf32>
    %296 = math.tanh %295 : vector<8x128xf32>
    %cst_83 = arith.constant 1.000000e+00 : f32
    %297 = vector.broadcast %cst_83 : f32 to vector<8x128xf32>
    %298 = arith.subf %297, %289 : vector<8x128xf32>
    %299 = arith.mulf %298, %296 : vector<8x128xf32>
    %300 = arith.mulf %289, %262 : vector<8x128xf32>
    %301 = arith.addf %299, %300 : vector<8x128xf32>
    %302 = vector.broadcast %266 : i32 to vector<8x1xi32>
    %303 = arith.cmpi slt, %302, %11 : vector<8x1xi32>
    %304 = arith.extui %303 : vector<8x1xi1> to vector<8x1xi32>
    %305 = arith.sitofp %304 : vector<8x1xi32> to vector<8x1xf32>
    %306 = vector.broadcast %305 : vector<8x1xf32> to vector<8x128xf32>
    %307 = arith.mulf %306, %301 : vector<8x128xf32>
    %cst_84 = arith.constant 1.000000e+00 : f32
    %308 = vector.broadcast %cst_84 : f32 to vector<8x1xf32>
    %309 = arith.subf %308, %305 : vector<8x1xf32>
    %310 = vector.broadcast %309 : vector<8x1xf32> to vector<8x128xf32>
    %311 = arith.mulf %310, %262 : vector<8x128xf32>
    %312 = arith.addf %307, %311 : vector<8x128xf32>
    %c6_i32 = arith.constant 6 : i32
    %c2_i32_85 = arith.constant 2 : i32
    %313 = arith.muli %c2_i32_85, %c6_i32 : i32
    %c7_i32_86 = arith.constant 7 : i32
    %314 = arith.subi %c7_i32_86, %313 : i32
    %315 = arith.muli %arg0, %314 : i32
    %316 = arith.addi %c6_i32, %315 : i32
    %c8_i32_87 = arith.constant 8 : i32
    %317 = arith.muli %316, %c8_i32_87 : i32
    %318 = tpu.assume_multiple %317, 8 : i32
    %319 = arith.index_cast %318 : i32 to index
    %c0_88 = arith.constant 0 : index
    %320 = vector.load %arg8[%319, %c0_88] : memref<64x384xf32, #tpu.memory_space<vmem>>, vector<8x384xf32>
    %c0_89 = arith.constant 0 : index
    %c0_90 = arith.constant 0 : index
    %c0_91 = arith.constant 0 : index
    %321 = vector.load %arg4[%c0_89, %c0_90, %c0_91] : memref<1x128x384xf32, #tpu.memory_space<vmem>>, vector<1x128x384xf32>
    %322 = vector.shape_cast %321 : vector<1x128x384xf32> to vector<128x384xf32>
    %cst_92 = arith.constant dense<0.000000e+00> : vector<8x384xf32>
    %323 = tpu.matmul %312, %322, %cst_92 {dimension_numbers = #tpu.dot_dimension_numbers<[1], [0], [0], [1], [0, 0, 1, 1], [], []>} : vector<8x128xf32>, vector<128x384xf32>, vector<8x384xf32> -> vector<8x384xf32>
    %324 = vector.extract_strided_slice %320 {offsets = [0, 0], sizes = [8, 128], strides = [1, 1]} : vector<8x384xf32> to vector<8x128xf32>
    %325 = vector.extract_strided_slice %323 {offsets = [0, 0], sizes = [8, 128], strides = [1, 1]} : vector<8x384xf32> to vector<8x128xf32>
    %326 = arith.addf %324, %325 : vector<8x128xf32>
    %327 = arith.negf %326 : vector<8x128xf32>
    %328 = math.exp %327 : vector<8x128xf32>
    %cst_93 = arith.constant 1.000000e+00 : f32
    %329 = vector.broadcast %cst_93 : f32 to vector<8x128xf32>
    %330 = arith.addf %329, %328 : vector<8x128xf32>
    %331 = arith.divf %329, %330 : vector<8x128xf32>
    %332 = vector.extract_strided_slice %320 {offsets = [0, 128], sizes = [8, 128], strides = [1, 1]} : vector<8x384xf32> to vector<8x128xf32>
    %333 = vector.extract_strided_slice %323 {offsets = [0, 128], sizes = [8, 128], strides = [1, 1]} : vector<8x384xf32> to vector<8x128xf32>
    %334 = arith.addf %332, %333 : vector<8x128xf32>
    %335 = arith.negf %334 : vector<8x128xf32>
    %336 = math.exp %335 : vector<8x128xf32>
    %cst_94 = arith.constant 1.000000e+00 : f32
    %337 = vector.broadcast %cst_94 : f32 to vector<8x128xf32>
    %338 = arith.addf %337, %336 : vector<8x128xf32>
    %339 = arith.divf %337, %338 : vector<8x128xf32>
    %340 = vector.extract_strided_slice %320 {offsets = [0, 256], sizes = [8, 128], strides = [1, 1]} : vector<8x384xf32> to vector<8x128xf32>
    %341 = vector.extract_strided_slice %323 {offsets = [0, 256], sizes = [8, 128], strides = [1, 1]} : vector<8x384xf32> to vector<8x128xf32>
    %342 = vector.broadcast %10 : vector<1x128xf32> to vector<8x128xf32>
    %343 = arith.addf %341, %342 : vector<8x128xf32>
    %344 = arith.mulf %331, %343 : vector<8x128xf32>
    %345 = arith.addf %340, %344 : vector<8x128xf32>
    %346 = math.tanh %345 : vector<8x128xf32>
    %cst_95 = arith.constant 1.000000e+00 : f32
    %347 = vector.broadcast %cst_95 : f32 to vector<8x128xf32>
    %348 = arith.subf %347, %339 : vector<8x128xf32>
    %349 = arith.mulf %348, %346 : vector<8x128xf32>
    %350 = arith.mulf %339, %312 : vector<8x128xf32>
    %351 = arith.addf %349, %350 : vector<8x128xf32>
    %352 = vector.broadcast %316 : i32 to vector<8x1xi32>
    %353 = arith.cmpi slt, %352, %11 : vector<8x1xi32>
    %354 = arith.extui %353 : vector<8x1xi1> to vector<8x1xi32>
    %355 = arith.sitofp %354 : vector<8x1xi32> to vector<8x1xf32>
    %356 = vector.broadcast %355 : vector<8x1xf32> to vector<8x128xf32>
    %357 = arith.mulf %356, %351 : vector<8x128xf32>
    %cst_96 = arith.constant 1.000000e+00 : f32
    %358 = vector.broadcast %cst_96 : f32 to vector<8x1xf32>
    %359 = arith.subf %358, %355 : vector<8x1xf32>
    %360 = vector.broadcast %359 : vector<8x1xf32> to vector<8x128xf32>
    %361 = arith.mulf %360, %312 : vector<8x128xf32>
    %362 = arith.addf %357, %361 : vector<8x128xf32>
    %c7_i32_97 = arith.constant 7 : i32
    %c2_i32_98 = arith.constant 2 : i32
    %363 = arith.muli %c2_i32_98, %c7_i32_97 : i32
    %c7_i32_99 = arith.constant 7 : i32
    %364 = arith.subi %c7_i32_99, %363 : i32
    %365 = arith.muli %arg0, %364 : i32
    %366 = arith.addi %c7_i32_97, %365 : i32
    %c8_i32_100 = arith.constant 8 : i32
    %367 = arith.muli %366, %c8_i32_100 : i32
    %368 = tpu.assume_multiple %367, 8 : i32
    %369 = arith.index_cast %368 : i32 to index
    %c0_101 = arith.constant 0 : index
    %370 = vector.load %arg8[%369, %c0_101] : memref<64x384xf32, #tpu.memory_space<vmem>>, vector<8x384xf32>
    %c0_102 = arith.constant 0 : index
    %c0_103 = arith.constant 0 : index
    %c0_104 = arith.constant 0 : index
    %371 = vector.load %arg4[%c0_102, %c0_103, %c0_104] : memref<1x128x384xf32, #tpu.memory_space<vmem>>, vector<1x128x384xf32>
    %372 = vector.shape_cast %371 : vector<1x128x384xf32> to vector<128x384xf32>
    %cst_105 = arith.constant dense<0.000000e+00> : vector<8x384xf32>
    %373 = tpu.matmul %362, %372, %cst_105 {dimension_numbers = #tpu.dot_dimension_numbers<[1], [0], [0], [1], [0, 0, 1, 1], [], []>} : vector<8x128xf32>, vector<128x384xf32>, vector<8x384xf32> -> vector<8x384xf32>
    %374 = vector.extract_strided_slice %370 {offsets = [0, 0], sizes = [8, 128], strides = [1, 1]} : vector<8x384xf32> to vector<8x128xf32>
    %375 = vector.extract_strided_slice %373 {offsets = [0, 0], sizes = [8, 128], strides = [1, 1]} : vector<8x384xf32> to vector<8x128xf32>
    %376 = arith.addf %374, %375 : vector<8x128xf32>
    %377 = arith.negf %376 : vector<8x128xf32>
    %378 = math.exp %377 : vector<8x128xf32>
    %cst_106 = arith.constant 1.000000e+00 : f32
    %379 = vector.broadcast %cst_106 : f32 to vector<8x128xf32>
    %380 = arith.addf %379, %378 : vector<8x128xf32>
    %381 = arith.divf %379, %380 : vector<8x128xf32>
    %382 = vector.extract_strided_slice %370 {offsets = [0, 128], sizes = [8, 128], strides = [1, 1]} : vector<8x384xf32> to vector<8x128xf32>
    %383 = vector.extract_strided_slice %373 {offsets = [0, 128], sizes = [8, 128], strides = [1, 1]} : vector<8x384xf32> to vector<8x128xf32>
    %384 = arith.addf %382, %383 : vector<8x128xf32>
    %385 = arith.negf %384 : vector<8x128xf32>
    %386 = math.exp %385 : vector<8x128xf32>
    %cst_107 = arith.constant 1.000000e+00 : f32
    %387 = vector.broadcast %cst_107 : f32 to vector<8x128xf32>
    %388 = arith.addf %387, %386 : vector<8x128xf32>
    %389 = arith.divf %387, %388 : vector<8x128xf32>
    %390 = vector.extract_strided_slice %370 {offsets = [0, 256], sizes = [8, 128], strides = [1, 1]} : vector<8x384xf32> to vector<8x128xf32>
    %391 = vector.extract_strided_slice %373 {offsets = [0, 256], sizes = [8, 128], strides = [1, 1]} : vector<8x384xf32> to vector<8x128xf32>
    %392 = vector.broadcast %10 : vector<1x128xf32> to vector<8x128xf32>
    %393 = arith.addf %391, %392 : vector<8x128xf32>
    %394 = arith.mulf %381, %393 : vector<8x128xf32>
    %395 = arith.addf %390, %394 : vector<8x128xf32>
    %396 = math.tanh %395 : vector<8x128xf32>
    %cst_108 = arith.constant 1.000000e+00 : f32
    %397 = vector.broadcast %cst_108 : f32 to vector<8x128xf32>
    %398 = arith.subf %397, %389 : vector<8x128xf32>
    %399 = arith.mulf %398, %396 : vector<8x128xf32>
    %400 = arith.mulf %389, %362 : vector<8x128xf32>
    %401 = arith.addf %399, %400 : vector<8x128xf32>
    %402 = vector.broadcast %366 : i32 to vector<8x1xi32>
    %403 = arith.cmpi slt, %402, %11 : vector<8x1xi32>
    %404 = arith.extui %403 : vector<8x1xi1> to vector<8x1xi32>
    %405 = arith.sitofp %404 : vector<8x1xi32> to vector<8x1xf32>
    %406 = vector.broadcast %405 : vector<8x1xf32> to vector<8x128xf32>
    %407 = arith.mulf %406, %401 : vector<8x128xf32>
    %cst_109 = arith.constant 1.000000e+00 : f32
    %408 = vector.broadcast %cst_109 : f32 to vector<8x1xf32>
    %409 = arith.subf %408, %405 : vector<8x1xf32>
    %410 = vector.broadcast %409 : vector<8x1xf32> to vector<8x128xf32>
    %411 = arith.mulf %410, %362 : vector<8x128xf32>
    %412 = arith.addf %407, %411 : vector<8x128xf32>
    %c8_i32_110 = arith.constant 8 : i32
    %c0_111 = arith.constant 0 : index
    %c0_112 = arith.constant 0 : index
    %c0_113 = arith.constant 0 : index
    %413 = vector.load %arg7[%c0_111, %c0_112, %c0_113] : memref<1x8x128xf32, #tpu.memory_space<vmem>>, vector<1x8x128xf32>
    %414 = vector.shape_cast %413 : vector<1x8x128xf32> to vector<8x128xf32>
    %415 = vector.shape_cast %412 : vector<8x128xf32> to vector<1x8x128xf32>
    tpu.vector_store %arg7[%c0_111, %c0_112, %c0_113], %415 {strides = array<i32>} : memref<1x8x128xf32, #tpu.memory_space<vmem>>, vector<1x8x128xf32>,
    return
  }
  func.func @transform_0(%arg0: i32) -> (i32, i32) {
    %c0_i32 = arith.constant 0 : i32
    %c0_i32_0 = arith.constant 0 : i32
    %c0_i32_1 = arith.constant 0 : i32
    return %c0_i32, %c0_i32_0 : i32, i32
  }
  func.func @transform_1(%arg0: i32) -> (i32, i32) {
    %c0_i32 = arith.constant 0 : i32
    %c0_i32_0 = arith.constant 0 : i32
    %c0_i32_1 = arith.constant 0 : i32
    return %c0_i32, %c0_i32_0 : i32, i32
  }
  func.func @transform_2(%arg0: i32) -> (i32, i32, i32) {
    %c0_i32 = arith.constant 0 : i32
    %c0_i32_0 = arith.constant 0 : i32
    %c0_i32_1 = arith.constant 0 : i32
    return %arg0, %c0_i32, %c0_i32_0 : i32, i32, i32
  }
  func.func @transform_3(%arg0: i32) -> (i32, i32, i32) {
    %c0_i32 = arith.constant 0 : i32
    %c0_i32_0 = arith.constant 0 : i32
    %c0_i32_1 = arith.constant 0 : i32
    return %arg0, %c0_i32, %c0_i32_0 : i32, i32, i32
  }
  func.func @transform_4(%arg0: i32) -> (i32, i32, i32) {
    %c0_i32 = arith.constant 0 : i32
    %c0_i32_0 = arith.constant 0 : i32
    %c0_i32_1 = arith.constant 0 : i32
    return %arg0, %c0_i32, %c0_i32_0 : i32, i32, i32
  }
  func.func @transform_5(%arg0: i32) -> (i32, i32, i32) {
    %c0_i32 = arith.constant 0 : i32
    %c0_i32_0 = arith.constant 0 : i32
    %c0_i32_1 = arith.constant 0 : i32
    return %arg0, %c0_i32, %c0_i32_0 : i32, i32, i32
  }
  func.func @transform_6(%arg0: i32) -> (i32, i32, i32) {
    %c0_i32 = arith.constant 0 : i32
    %c0_i32_0 = arith.constant 0 : i32
    %c0_i32_1 = arith.constant 0 : i32
    return %arg0, %c0_i32, %c0_i32_0 : i32, i32, i32
  }
}

</mosaic_0001>

<bundles_post_ra>
// kernel: tpu_custom_call.1
= control target key start
LH: loop header
LB: loop body
LE: loop exit
PB: predicated region body
PF: predicated region fallthrough
CT: control target
= control target key end

     0   :  { %s4684_s0 = inlined_call_operand.hbm [shape: f32[64,128], index: 0, kind: input, shape index: {}]   ;;  %s4685_s1 = inlined_call_operand.vmem [shape: s32[8,1], index: 1, kind: input, shape index: {}]   ;;  %s4686_s2 = inlined_call_operand.hbm [shape: f32[2,128,384], index: 2, kind: input, shape index: {}]   ;;  %s4687_s3 = inlined_call_operand.hbm [shape: f32[2,128,384], index: 3, kind: input, shape index: {}]   ;;  %s4688_s4 = inlined_call_operand.vmem [shape: f32[2,1,384], index: 4, kind: input, shape index: {}]   ;;  %s4689_s5 = inlined_call_operand.vmem [shape: f32[2,1,128], index: 5, kind: input, shape index: {}]   ;;  %s4690_s6 = inlined_call_operand.hbm [shape: f32[2,8,128], index: 6, kind: output, shape index: {}]  }
   0x1   :  { %4697 = sst [smem:[#allocation13_spill]] %s4686_s2 }
   0x2   :  { %4698 = sst [smem:[#allocation14_spill]] %s4687_s3 }
   0x3   :  { %11 = vsyncpa [#allocation4], 0 }
   0x4   :  { %12 = vsyncpa [#allocation7], 0 }
   0x5   :  { %14 = vsyncpa [#allocation7 + $0x1], 0 }
   0x6   :  { %15 = vsyncpa [#allocation5], 0 }
   0x7   :  { %17 = vsyncpa [#allocation5 + $0x1], 0  ;;  %s3850_s21 = smov 0   ;;  %s3852_s22 = smov 0  }
   0x8   :  { %s3854_s23 = smov 0   ;;  %s3856_s24 = smov 0  }
   0x9 LB: > { %s3871_s25 = sadd.s32 1, %s3801_s24   ;;  %s72_s26 = sadd.s32 1, %s3797_s23  ;;  %s3801_s24 = sphi %s3856_s24, %s4721_s24   ;;  %s3797_s23 = sphi %s3854_s23, %s4720_s23   ;;  %s3793_s22 = sphi %s3852_s22, %s4719_s22   ;;  %s3789_s21 = sphi %s3850_s21, %s4718_s21  }
   0xa   : > { %s69_s27 = ssub.s32 %s3801_s24, %s3871_s25  ;;  %p79_p0 = scmp.ne.s32.totalorder %s3797_s23, %s3793_s22 }
   0xb   : > { %p70_p1 = scmp.eq.s32.totalorder %s69_s27, 0  ;;  %p80_p2 = scmp.eq.s32.totalorder %s3801_s24, 0 }
   0xc   : > { %p3517_p4 = scmp.lt.s32.totalorder %s3801_s24, 2  ;;  %s229_s29 = sand.u32 1, %s3801_s24  }
   0xd   : > { %s3882_s28 = scalar_select %p70_p1, %s3797_s23, %s72_s26  }
   0xe   : > { %p81_p5 = por %p80_p2, %p79_p0  ;;  %s231_s30 = sand.u32 1, %s3797_s23  }
   0xf   : > { %s3889_s7 = smul.u32 384, %s231_s30  ;;  %s4700_s2 = sld [smem:[#allocation13_spill]] }
  0x10   : > { %p3891_p6 = pnand %p3517_p4, %p81_p5  ;;  %s3486_s9 = smul.u32 6144, %s3801_s24 }
  0x11   : > { %s233_s13 = scalar_lea.vmem [#allocation6], %s3889_s7  ;;  %s3906_s15 = scalar_lea.sflag [#allocation7], %s229_s29 }
  0x12   : > { %s240_s14 = sshll.u32 %s233_s13, 4  ;;  %p3645_p8 = pneg %p3891_p6  ;;  %s3904_s14 = int_to_ptr.vmem [resolvable:$true] %s240_s14 }
  0x15   : > { %s3901_s12 = scalar_lea.hbm %s4700_s2, %s3486_s9  ;;  %s3648_s19 = scalar_lea.hbm %s4700_s2, 12288 }
  0x16   : > { %s3643_s16 = scalar_lea.hbm %s3901_s12, 6144  ;;  %p3649_p11 = scmp.lt.u32.totalorder %s3901_s12, %s4700_s2 }
  0x17   : > { %p3644_p7 = scmp.ne.s32.totalorder %s3901_s12, %s3643_s16  ;;  %p3650_p12 = scmp.lt.u32.totalorder %s3648_s19, %s3643_s16 }
  0x18   : > { %p3652_p1 = scmp.lt.u32.totalorder %s3643_s16, %s3901_s12 }
  0x19   : > { %p3646_p9 = pnand %p3645_p8, %p3644_p7  ;;  %p3651_p13 = por %p3650_p12, %p3649_p11 }
  0x1b   : > { %p3647_p10 = pneg %p3646_p9  ;;  %p3653_p2 = por %p3652_p1, %p3651_p13 }
  0x1d   : > { %p3654_p4 = pnand %p3653_p2, %p3647_p10 }
  0x1f   : > { %3657 = shalt.err (!%p3654_p4)
}
  0x20   : > { %s3658_s27 = scalar_lea.vmem %s3904_s14, 6144  ;;  %s3803_s29 = smov [#allocation6]  }
  0x21   : > { %p3659_p5 = scmp.ne.s32.totalorder %s3904_s14, %s3658_s27  ;;  %s3663_s30 = sshll.u32 %s3803_s29, 4  ;;  %s3664_s30 = int_to_ptr.vmem [resolvable:$false] %s3663_s30 }
  0x22   : > { %s3665_s10 = scalar_lea.vmem %s3664_s30, 12288  ;;  %p3666_p3 = scmp.lt.s32.totalorder %s3904_s14, %s3664_s30 }
  0x23   : > { %p3661_p7 = pnand %p3659_p5, %p3645_p8  ;;  %p3667_p11 = scmp.lt.s32.totalorder %s3665_s10, %s3658_s27 }
  0x25   : > { %p3662_p9 = pneg %p3661_p7  ;;  %p3668_p12 = por %p3667_p11, %p3666_p3 }
  0x27   : > { %p3669_p13 = pnand %p3668_p12, %p3662_p9 }
  0x29   : > { %3672 = shalt.err (!%p3669_p13)
}
  0x2a   : > { %s4691_s11 = smov 384   ;;  %s4692_s13 = smov 24  }
  0x2b   : > { %3508 = dma.hbm_to_vmem [thread:$0]  (!%p3891_p6), %s3901_s12, 6144, %s3904_s14, %s3906_s15, %s4691_s11, %s4691_s11, %s4692_s13  }
  0x2c   : > { %s3938_s16 = sadd.s32 4294967295, %s3801_s24   ;;  %s2411_s17 = sadd.s32 4294967294, %s3801_s24  }
  0x2d   : > { %p85_p3 = scmp.ne.s32.totalorder %s3793_s22, %s3789_s21  ;;  %p4693_p10 = scmp.eq.s32.totalorder %s3938_s16, 0 }
  0x2e   : > { %p187_p1 = scmp.eq.s32.totalorder %s3938_s16, 1  ;;  %p193_p2 = scmp.eq.s32.totalorder %s2411_s17, 1 }
  0x2f   : > { %p3947_p4 = por %p4693_p10, %p85_p3  ;;  %p2412_p5 = scmp.ge.s32.totalorder %s3801_s24, 1 }
  0x30   : > { %p3955_p7 = por %p187_p1, %p79_p0  ;;  %p3959_p9 = por %p193_p2, %p85_p3 }
  0x31   : > { %s4701_s18 = scalar_select %p3947_p4, 1, 0 }
  0x32   : > { %s4702_s12 = scalar_select %p3955_p7, 1, 0 }
  0x33   : > { %s4703_s14 = scalar_select %p3959_p9, 1, 0 }
  0x34   : > { %p200_p11 = scmp.lt.s32.totalorder %s3801_s24, 3  ;;  %s3806_s20 = smov [#allocation3]  }
  0x35   : > { %s212_s26 = sshll.u32 %s3806_s20, 4  ;;  %s4705_s3 = sld [smem:[#allocation14_spill]]  ;;  %s3968_s26 = int_to_ptr.vmem [resolvable:$true] %s212_s26 }
  0x36   : > { %p3964_p12 = pnand %p2412_p5, %p200_p11  ;;  %s254_s10 = scalar_lea.vmem [#allocation8], %s3889_s7 }
  0x37   : > { %s261_s17 = sshll.u32 %s254_s10, 4  ;;  %s3986_s17 = int_to_ptr.vmem [resolvable:$true] %s261_s17 }
  0x38   : > { %s4704_s19 = scalar_select %p3964_p12, 1, 0 }
  0x39   : > { %p3501_p13 = pneg %p3964_p12 }
  0x3b   : > { %s3977_s30 = scalar_lea.hbm %s4705_s3, %s3486_s9  ;;  %p3982_p0 = pnand %p3501_p13, %p4693_p10 }
  0x3c   : > { %s3673_s20 = scalar_lea.hbm %s3977_s30, 6144  ;;  %s3678_s29 = scalar_lea.hbm %s4705_s3, 12288 }
  0x3d   : > { %p3674_p3 = scmp.ne.s32.totalorder %s3977_s30, %s3673_s20  ;;  %p3679_p5 = scmp.lt.u32.totalorder %s3977_s30, %s4705_s3 }
  0x3e   : > { %p3680_p11 = scmp.lt.u32.totalorder %s3678_s29, %s3673_s20  ;;  %p3682_p10 = scmp.lt.u32.totalorder %s3673_s20, %s3977_s30 }
  0x3f   : > { %p3676_p1 = pnand %p3674_p3, %p3645_p8 }
  0x40   : > { %p3681_p13 = por %p3680_p11, %p3679_p5 }
  0x41   : > { %p3677_p2 = pneg %p3676_p1 }
  0x42   : > { %p3683_p9 = por %p3682_p10, %p3681_p13 }
  0x44   : > { %p3684_p7 = pnand %p3683_p9, %p3677_p2 }
  0x46   : > { %3687 = shalt.err (!%p3684_p7)
}
  0x47   : > { %s3688_s10 = scalar_lea.vmem %s3986_s17, 6144  ;;  %s3807_s9 = smov [#allocation8]  }
  0x48   : > { %p3689_p3 = scmp.ne.s32.totalorder %s3986_s17, %s3688_s10  ;;  %s3693_s27 = sshll.u32 %s3807_s9, 4  ;;  %s3694_s27 = int_to_ptr.vmem [resolvable:$false] %s3693_s27 }
  0x49   : > { %s3695_s13 = scalar_lea.vmem %s3694_s27, 12288  ;;  %p3696_p12 = scmp.lt.s32.totalorder %s3986_s17, %s3694_s27 }
  0x4a   : > { %p3691_p1 = pnand %p3689_p3, %p3645_p8  ;;  %p3697_p5 = scmp.lt.s32.totalorder %s3695_s13, %s3688_s10 }
  0x4c   : > { %p3692_p4 = pneg %p3691_p1  ;;  %p3698_p11 = por %p3697_p5, %p3696_p12 }
  0x4e   : > { %p3699_p10 = pnand %p3698_p11, %p3692_p4 }
  0x50   : > { %3702 = shalt.err (!%p3699_p10)
}
  0x51   : > { %s4707_s20 = smov 24   ;;  %s4708_s29 = smov 384  }
  0x52   : > { %3511 = dma.hbm_to_vmem [thread:$0]  (!%p3891_p6), %s3977_s30, 6144, %s3986_s17, %s3906_s15, %s4708_s29, %s4708_s29, %s4707_s20  }
  0x53   : > { %s3703_s9 = scalar_lea.hbm %s4684_s0, 1024  ;;  %p3705_p4 = pneg %p3982_p0 }
  0x54   : > { %p3704_p8 = scmp.ne.s32.totalorder %s4684_s0, %s3703_s9  ;;  %p3710_p12 = scmp.lt.u32.totalorder %s3703_s9, %s4684_s0 }
  0x56   : > { %p3706_p7 = pnand %p3705_p4, %p3704_p8 }
  0x58   : > { %p3707_p9 = pneg %p3706_p7 }
  0x5a   : > { %p3712_p2 = pnand %p3710_p12, %p3707_p9 }
  0x5c   : > { %3715 = shalt.err (!%p3712_p2)
}
  0x5d   : > { %s3716_s15 = scalar_lea.vmem %s3968_s26, 1024  ;;  %p3724_p1 = scmp.lt.s32.totalorder %s3968_s26, %s3968_s26 }
  0x5e   : > { %p3717_p6 = scmp.ne.s32.totalorder %s3968_s26, %s3716_s15  ;;  %p3725_p5 = scmp.lt.s32.totalorder %s3716_s15, %s3716_s15 }
  0x60   : > { %p3719_p13 = pnand %p3717_p6, %p3705_p4  ;;  %p3726_p11 = por %p3725_p5, %p3724_p1 }
  0x62   : > { %p3720_p3 = pneg %p3719_p13 }
  0x64   : > { %p3727_p10 = pnand %p3726_p11, %p3720_p3 }
  0x66   : > { %3730 = shalt.err (!%p3727_p10)
}
  0x67   : > { %s3808_s2 = smov 128   ;;  %s3809_s3 = smov 8  }
  0x68   : > { %3504 = dma.hbm_to_vmem [thread:$0]  (!%p3982_p0), %s4684_s0, 1024, %s3968_s26, [#allocation4], %s3808_s2, %s3808_s2, %s3809_s3  }
  0x69   : > { %p4709_p8 = scmp.ne.s32.totalorder %s4704_s19, 0 }
  0x6a   : > { %p4710_p4 = scmp.eq.s32.totalorder (!%p4709_p8), %s3938_s16, 0 }
  0x6b   : > { %286 = sbr.rel (%p4709_p8) target bundleno = 2312 (0x908), region = 44 }
  0x72   : > { %3776 = dma.done.wait (%p4710_p4), [#allocation4], 1024   ;;  %p4711_p7 = pmov %p4710_p4 }
  0x73   : > { %s292_s13 = sand.u32 1, %s3938_s16   ;;  %s4044_s20 = sand.u32 1, %s3793_s22  }
  0x74   : > { %3778 = vsyncadd (%p4711_p7), [#allocation4], 4294966272  ;;  %s3489_s11 = smul.u32 384, %s4044_s20  ;;  %s293_s29 = scalar_lea.sflag [#allocation7], %s292_s13 }
  0x75   : > { %p4712_p0 = scmp.ne.s32.totalorder %s4701_s18, 0 }
  0x76   : > { %s4049_s26 = scalar_lea.vmem [#allocation6], %s3489_s11 }
  0x77   : > { %3780 = dma.done.wait (%p4712_p0), %s293_s29, 12288  }
  0x78   : > { %3782 = vsyncadd (%p4712_p0), %s293_s29, 4294955008  ;;  %v3810_v0 = vmov 0.0   ;;  %v3811_v1 = vmov 0   ;;  %v362_v2 = vld [vmem:[%s4049_s26 + $0x8] sm:$0xff]  ;;  %v365_v3 = vld [vmem:[%s4049_s26 + $0x20] sm:$0xff]  ;;  %s4107_s18 = scalar_lea.vmem [#allocation8], %s3489_s11 }
  0x79   : > { %490 = vmatprep.mubr.f32.mxu0 %v3810_v0  ;;  %3561 = vset.pattern.permute.xlu0 %v3811_v1  ;;  %v361_v4 = vld [vmem:[%s4049_s26] sm:$0xff]  ;;  %v2973_v5 = vpack.c.bf16 %v365_v3, %v362_v2  ;;  %v364_v6 = vld [vmem:[%s4049_s26 + $0x18] sm:$0xff]  ;;  %v371_v8 = vld [vmem:[%s4049_s26 + $0x50] sm:$0xff]  ;;  %s670_s19 = smul.u32 7, %s3938_s16  ;;  %s1299_s2 = sadd.s32 3, %s3938_s16  ;;  %vm3813_vm2 = vmmov 0  }
  0x7a   : > { %3562 = vset.pattern.permute.xlu1 %v3811_v1  ;;  %v368_v7 = vld [vmem:[%s4049_s26 + $0x38] sm:$0xff]  ;;  %v2975_v9 = vpack.c.bf16 %v364_v6, %v361_v4  ;;  %v367_v11 = vld [vmem:[%s4049_s26 + $0x30] sm:$0xff]  ;;  %v370_v12 = vld [vmem:[%s4049_s26 + $0x48] sm:$0xff]  ;;  %s915_s27 = smul.u32 5, %s3938_s16  ;;  %s1490_s3 = ssub.s32 4, %s3938_s16 }
  0x7b   : > { %v2977_v10 = vpack.c.bf16 %v371_v8, %v368_v7  ;;  %v374_v13 = vld [vmem:[%s4049_s26 + $0x68] sm:$0xff]  ;;  %2974 = vmatprep.subr.bf16.mxu0 %v2973_v5  ;;  %v377_v14 = vld [vmem:[%s4049_s26 + $0x80] sm:$0xff]  ;;  %v2979_v15 = vpack.c.bf16 %v370_v12, %v367_v11  ;;  %v376_v18 = vld [vmem:[%s4049_s26 + $0x78] sm:$0xff]  ;;  %s1107_s8 = smul.u32 3, %s3938_s16  ;;  %p346_p9 = scmp.lt.s32.totalorder %s3938_s16, 1 }
  0x7c   : > { %2976 = vmatpush1.bf16.msra.mxu0 %v2975_v9  ;;  %v373_v16 = vld [vmem:[%s4049_s26 + $0x60] sm:$0xff]  ;;  %v2981_v17 = vpack.c.bf16 %v377_v14, %v374_v13  ;;  %v363_v19 = vld [vmem:[%s4049_s26 + $0x10] sm:$0xff]  ;;  %v366_v20 = vld [vmem:[%s4049_s26 + $0x28] sm:$0xff]  ;;  %s4191_s10 = sadd.s32 1, %s915_s27  ;;  %s1681_s30 = smul.u32 4294967293, %s3938_s16 }
  0x7d   : > { %2978 = vmatprep.subr.bf16.mxu0 %v2977_v10  ;;  %v380_v21 = vld [vmem:[%s4049_s26 + $0x98] sm:$0xff]  ;;  %v383_v22 = vld [vmem:[%s4049_s26 + $0xb0] sm:$0xff]  ;;  %v3005_v23 = vpack.c.bf16 %v366_v20, %v363_v19  ;;  %v369_v24 = vld [vmem:[%s4049_s26 + $0x40] sm:$0xff]  ;;  %v2983_v26 = vpack.c.bf16 %v376_v18, %v373_v16  ;;  %v897_v20 = vstv %s670_s19  ;;  %s4205_s15 = sadd.s32 2, %s1107_s8  ;;  %s1873_s13 = smul.u32 4294967291, %s3938_s16 }
  0x7e   : > { %v372_v25 = vld [vmem:[%s4049_s26 + $0x58] sm:$0xff]  ;;  %v379_v27 = vld [vmem:[%s4049_s26 + $0x90] sm:$0xff]  ;;  %v2985_v29 = vpack.c.bf16 %v383_v22, %v380_v21  ;;  %v382_v30 = vld [vmem:[%s4049_s26 + $0xa8] sm:$0xff]  ;;  %s1682_s17 = sadd.s32 5, %s1681_s30  ;;  %s2065_s29 = smul.u32 4294967289, %s3938_s16 }
  0x7f   : > { %3006 = vmatprep.subr.bf16.mxu1 %v3005_v23  ;;  %v3009_v28 = vpack.c.bf16 %v372_v25, %v369_v24  ;;  %v375_v31 = vld [vmem:[%s4049_s26 + $0x70] sm:$0xff]  ;;  %v378_v32 = vld [vmem:[%s4049_s26 + $0x88] sm:$0xff]  ;;  %v389_v34 = vld [vmem:[%s4049_s26 + $0xe0] sm:$0xff]  ;;  %v2987_v38 = vpack.c.bf16 %v382_v30, %v379_v27  ;;  %s1874_s11 = sadd.s32 6, %s1873_s13  ;;  %s671_s8 = smul.u32 56, %s3938_s16 }
  0x80   : > { %2980 = vmatpush1.bf16.msra.mxu0 %v2979_v15  ;;  %3008 = vmatpush3.bf16.msra.mxu1 %v3005_v23  ;;  %v386_v33 = vld [vmem:[%s4049_s26 + $0xc8] sm:$0xff]  ;;  %v3013_v35 = vpack.c.bf16 %v378_v32, %v375_v31  ;;  %v381_v36 = vld [vmem:[%s4049_s26 + $0xa0] sm:$0xff]  ;;  %v384_v37 = vld [vmem:[%s4049_s26 + $0xb8] sm:$0xff]  ;;  %s2485_s7 = smul.u32 24, %s3938_s16  ;;  %p4715_p2 = scmp.ne.s32.totalorder %s4702_s12, 0 }
  0x81   : > { %2982 = vmatprep.subr.bf16.mxu0 %v2981_v17  ;;  %3010 = vmatprep.subr.bf16.mxu1 %v3009_v28  ;;  %v2989_v39 = vpack.c.bf16 %v389_v34, %v386_v33  ;;  %v385_v40 = vld [vmem:[%s4049_s26 + $0xc0] sm:$0xff]  ;;  %v388_v41 = vld [vmem:[%s4049_s26 + $0xd8] sm:$0xff]  ;;  %v395_v43 = vld [vmem:[%s4049_s26 + $0x110] sm:$0xff]  ;;  %v3017_v44 = vpack.c.bf16 %v384_v37, %v381_v36  ;;  %v3812_v37 = vmov 0.0|0.0  }
  0x82   : > { %v392_v42 = vld [vmem:[%s4049_s26 + $0xf8] sm:$0xff]  ;;  %v4086_v45 = vld [vmem:[#allocation3] sm:$0xff]  ;;  %v387_v46 = vld [vmem:[%s4049_s26 + $0xd0] sm:$0xff]  ;;  %v2991_v48 = vpack.c.bf16 %v388_v41, %v385_v40  ;;  %s2469_s9 = sadd.s32 16, %s2485_s7 }
  0x83   : > { %v390_v47 = vld [vmem:[%s4049_s26 + $0xe8] sm:$0xff]  ;;  %2681 = vmatprep.mubr.f32.mxu1 %v4086_v45  ;;  %v2993_v49 = vpack.c.bf16 %v395_v43, %v392_v42  ;;  %v391_v50 = vld [vmem:[%s4049_s26 + $0xf0] sm:$0xff]  ;;  %v401_v53 = vld [vmem:[%s4049_s26 + $0x140] sm:$0xff] }
  0x84   : > { %2984 = vmatpush1.bf16.msra.mxu0 %v2983_v26  ;;  %3012 = vmatpush3.bf16.msra.mxu1 %v3009_v28  ;;  %v394_v51 = vld [vmem:[%s4049_s26 + $0x108] sm:$0xff]  ;;  %v3021_v54 = vpack.c.bf16 %v390_v47, %v387_v46  ;;  %v393_v55 = vld [vmem:[%s4049_s26 + $0x100] sm:$0xff]  ;;  %v396_v56 = vld [vmem:[%s4049_s26 + $0x118] sm:$0xff] }
  0x85   : > { %2986 = vmatprep.subr.bf16.mxu0 %v2985_v29  ;;  %3014 = vmatprep.subr.bf16.mxu1 %v3013_v35  ;;  %v398_v52 = vld [vmem:[%s4049_s26 + $0x128] sm:$0xff]  ;;  %v2995_v57 = vpack.c.bf16 %v394_v51, %v391_v50  ;;  %v397_v59 = vld [vmem:[%s4049_s26 + $0x120] sm:$0xff]  ;;  %v400_v60 = vld [vmem:[%s4049_s26 + $0x138] sm:$0xff]  ;;  %v3025_v63 = vpack.c.bf16 %v396_v56, %v393_v55 }
  0x86   : > { %v2997_v58 = vpack.c.bf16 %v401_v53, %v398_v52  ;;  %v404_v61 = vld [vmem:[%s4049_s26 + $0x158] sm:$0xff]  ;;  %v407_v62 = vld [vmem:[%s4049_s26 + $0x170] sm:$0xff]  ;;  %v402_v2 = vld [vmem:[%s4049_s26 + $0x148] sm:$0xff]  ;;  %v2999_v3 = vpack.c.bf16 %v400_v60, %v397_v59 }
  0x87   : > { %v399_v1 = vld [vmem:[%s4049_s26 + $0x130] sm:$0xff]  ;;  %v3001_v4 = vpack.c.bf16 %v407_v62, %v404_v61  ;;  %v406_v6 = vld [vmem:[%s4049_s26 + $0x168] sm:$0xff]  ;;  %v684_v8 = vld [vmem:[%s4107_s18 + $0x20] sm:$0xff] }
  0x88   : > { %2988 = vmatpush1.bf16.msra.mxu0 %v2987_v38  ;;  %3016 = vmatpush3.bf16.msra.mxu1 %v3013_v35  ;;  %v403_v5 = vld [vmem:[%s4049_s26 + $0x150] sm:$0xff]  ;;  %v681_v7 = vld [vmem:[%s4107_s18 + $0x8] sm:$0xff]  ;;  %v3029_v9 = vpack.c.bf16 %v402_v2, %v399_v1  ;;  %v405_v10 = vld [vmem:[%s4049_s26 + $0x160] sm:$0xff] }
  0x89   : > { %2990 = vmatprep.subr.bf16.mxu0 %v2989_v39  ;;  %3018 = vmatprep.subr.bf16.mxu1 %v3017_v44  ;;  %v408_v11 = vld [vmem:[%s4049_s26 + $0x178] sm:$0xff]  ;;  %v3003_v12 = vpack.c.bf16 %v406_v6, %v403_v5  ;;  %v4114_v13 = vpack.c.bf16 %v684_v8, %v681_v7  ;;  %v680_v14 = vld [vmem:[%s4107_s18] sm:$0xff]  ;;  %v690_v17 = vld [vmem:[%s4107_s18 + $0x50] sm:$0xff]  ;;  %v1089_v5 = vstv %s4191_s10  ;;  %s2066_s26 = sadd.s32 7, %s2065_s29  ;;  %s672_s10 = sshra.s32 %s671_s8, 3 }
  0x8a   : > { %v683_v15 = vld [vmem:[%s4107_s18 + $0x18] sm:$0xff]  ;;  %v3033_v18 = vpack.c.bf16 %v408_v11, %v405_v10  ;;  %v686_v22 = vld [vmem:[%s4107_s18 + $0x30] sm:$0xff]  ;;  %v689_v23 = vld [vmem:[%s4107_s18 + $0x48] sm:$0xff] }
  0x8b   : > { %v687_v16 = vld [vmem:[%s4107_s18 + $0x38] sm:$0xff]  ;;  %v4120_v19 = vpack.c.bf16 %v683_v15, %v680_v14  ;;  %v693_v24 = vld [vmem:[%s4107_s18 + $0x68] sm:$0xff]  ;;  %v696_v25 = vld [vmem:[%s4107_s18 + $0x80] sm:$0xff]  ;;  %v4140_v30 = vpack.c.bf16 %v689_v23, %v686_v22  ;;  %v1281_v14 = vstv %s4205_s15  ;;  %s2464_s15 = smul.u32 24, %s672_s10 }
  0x8c   : > { %2992 = vmatpush1.bf16.msra.mxu0 %v2991_v48  ;;  %3020 = vmatpush3.bf16.msra.mxu1 %v3017_v44  ;;  %v4123_v21 = vpack.c.bf16 %v690_v17, %v687_v16  ;;  %v4132_v26 = vld [vmem:[%s4685_s1] sm:$0xff]  ;;  %v682_v27 = vld [vmem:[%s4107_s18 + $0x10] sm:$0xff]  ;;  %v685_v28 = vld [vmem:[%s4107_s18 + $0x28] sm:$0xff]  ;;  %v4146_v32 = vpack.c.bf16 %v696_v25, %v693_v24 }
  0x8d   : > { %2994 = vmatprep.subr.bf16.mxu0 %v2993_v49  ;;  %3022 = vmatprep.subr.bf16.mxu1 %v3021_v54  ;;  %vm898_vm0 = vcmp.lt.s32.totalorder %v897_v20, %v4132_v26  ;;  %v354_v29 = vld [vmem:[#allocation3 + $0x8] sm:$0xff]  ;;  %v692_v33 = vld [vmem:[%s4107_s18 + $0x60] sm:$0xff]  ;;  %v695_v34 = vld [vmem:[%s4107_s18 + $0x78] sm:$0xff]  ;;  %v4153_v38 = vpack.c.bf16 %v685_v28, %v682_v27  ;;  %vm4224_vm1 = vcmp.lt.s32.totalorder %v1089_v5, %v4132_v26 }
  0x8e   : > { %v4143_v31 = vsel %vm898_vm0, 1.0, %v3810_v0  ;;  %v699_v35 = vld [vmem:[%s4107_s18 + $0x98] sm:$0xff]  ;;  %v702_v36 = vld [vmem:[%s4107_s18 + $0xb0] sm:$0xff]  ;;  %v688_v39 = vld [vmem:[%s4107_s18 + $0x40] sm:$0xff]  ;;  %v4160_v42 = vpack.c.bf16 %v695_v34, %v692_v33  ;;  %vm1282_vm3 = vcmp.lt.s32.totalorder %v1281_v14, %v4132_v26  ;;  %v2429_v28 = vsel %vm4224_vm1, 1.0, %v3810_v0 }
  0x8f   : > { %903 = vperm.xlu0 %3561, %v4143_v31   ;;  %v691_v40 = vld [vmem:[%s4107_s18 + $0x58] sm:$0xff]  ;;  %v355_v41 = vld [vmem:[#allocation3 + $0x10] sm:$0xff]  ;;  %v4163_v43 = vpack.c.bf16 %v702_v36, %v699_v35  ;;  %v705_v46 = vld [vmem:[%s4107_s18 + $0xc8] sm:$0xff]  ;;  %v907_v20 = vsub.f32 1.0, %v4143_v31  ;;  %v1472_v31 = vstv %s1299_s2  ;;  %1095 = vperm.xlu1 %3562, %v2429_v28   ;;  %s676_s2 = scalar_lea.vmem [#allocation2], %s2464_s15  ;;  %s2471_s15 = sshll.u32 %s3938_s16, 3 }
  0x90   : > { %2996 = vmatpush1.bf16.msra.mxu0 %v2995_v57  ;;  %3024 = vmatpush3.bf16.msra.mxu1 %v3021_v54  ;;  %v698_v44 = vld [vmem:[%s4107_s18 + $0x90] sm:$0xff]  ;;  %v708_v47 = vld [vmem:[%s4107_s18 + $0xe0] sm:$0xff]  ;;  %v4170_v48 = vpack.c.bf16 %v691_v40, %v688_v39  ;;  %v697_v50 = vld [vmem:[%s4107_s18 + $0x88] sm:$0xff]  ;;  %v2434_v39 = vsel %vm1282_vm3, 1.0, %v3810_v0  ;;  %v1099_v40 = vsub.f32 1.0, %v2429_v28  ;;  %vm1473_vm4 = vcmp.lt.s32.totalorder %v1472_v31, %v4132_v26 }
  0x91   : > { %2998 = vmatprep.subr.bf16.mxu0 %v2997_v58  ;;  %3026 = vmatprep.subr.bf16.mxu1 %v3025_v63  ;;  %v694_v49 = vld [vmem:[%s4107_s18 + $0x70] sm:$0xff]  ;;  %v356_v51 = vld [vmem:[#allocation3 + $0x18] sm:$0xff]  ;;  %v357_v53 = vld [vmem:[#allocation3 + $0x20] sm:$0xff]  ;;  %v4181_v54 = vpack.c.bf16 %v708_v47, %v705_v46  ;;  %v1663_v46 = vstv %s1490_s3 }
  0x92   : > { %v704_v55 = vld [vmem:[%s4107_s18 + $0xc0] sm:$0xff]  ;;  %v707_v56 = vld [vmem:[%s4107_s18 + $0xd8] sm:$0xff]  ;;  %v714_v58 = vld [vmem:[%s4107_s18 + $0x110] sm:$0xff]  ;;  %v4189_v59 = vpack.c.bf16 %v697_v50, %v694_v49  ;;  %v1291_v49 = vsub.f32 1.0, %v2434_v39  ;;  %v2439_v50 = vsel %vm1473_vm4, 1.0, %v3810_v0  ;;  %vm1664_vm5 = vcmp.lt.s32.totalorder %v1663_v46, %v4132_v26 }
  0x93   : > { %v711_v57 = vld [vmem:[%s4107_s18 + $0xf8] sm:$0xff]  ;;  %v700_v60 = vld [vmem:[%s4107_s18 + $0xa0] sm:$0xff]  ;;  %v358_v62 = vld [vmem:[#allocation3 + $0x28] sm:$0xff]  ;;  %910 = vperm.xlu0 %3561, %v907_v20   ;;  %1102 = vperm.xlu1 %3562, %v1099_v40  }
  0x94   : > { %3000 = vmatpush1.bf16.msra.mxu0 %v2999_v3  ;;  %3028 = vmatpush3.bf16.msra.mxu1 %v3025_v63  ;;  %v703_v61 = vld [vmem:[%s4107_s18 + $0xb8] sm:$0xff]  ;;  %v4198_v63 = vpack.c.bf16 %v707_v56, %v704_v55  ;;  %v359_v1 = vld [vmem:[#allocation3 + $0x30] sm:$0xff]  ;;  %v4201_v2 = vpack.c.bf16 %v714_v58, %v711_v57  ;;  %v717_v7 = vld [vmem:[%s4107_s18 + $0x128] sm:$0xff]  ;;  %v1855_v55 = vstv %s1682_s17  ;;  %v1482_v57 = vsub.f32 1.0, %v2439_v50 }
  0x95   : > { %3002 = vmatprep.subr.bf16.mxu0 %v3001_v4  ;;  %3030 = vmatprep.subr.bf16.mxu1 %v3029_v9  ;;  %v710_v3 = vld [vmem:[%s4107_s18 + $0xf0] sm:$0xff]  ;;  %v713_v4 = vld [vmem:[%s4107_s18 + $0x108] sm:$0xff]  ;;  %v4208_v6 = vld [vmem:[#allocation3 + $0x38] sm:$0xff]  ;;  %v2444_v58 = vsel %vm1664_vm5, 1.0, %v3810_v0  ;;  %vm1856_vm6 = vcmp.lt.s32.totalorder %v1855_v55, %v4132_v26 }
  0x96   : > { %v720_v8 = vld [vmem:[%s4107_s18 + $0x140] sm:$0xff]  ;;  %v706_v10 = vld [vmem:[%s4107_s18 + $0xd0] sm:$0xff]  ;;  %v709_v11 = vld [vmem:[%s4107_s18 + $0xe8] sm:$0xff] }
  0x97   : > { %v4230_v16 = vpack.c.bf16 %v720_v8, %v717_v7  ;;  %v716_v17 = vld [vmem:[%s4107_s18 + $0x120] sm:$0xff]  ;;  %v723_v22 = vld [vmem:[%s4107_s18 + $0x158] sm:$0xff]  ;;  %v726_v23 = vld [vmem:[%s4107_s18 + $0x170] sm:$0xff]  ;;  %v4239_v24 = vpack.c.bf16 %v709_v11, %v706_v10  ;;  %1287 = vperm.xlu0 %3561, %v2434_v39   ;;  %1294 = vperm.xlu1 %3562, %v1291_v49   ;;  %v411_v7 = vlaneseq }
  0x98   : > { %3004 = vmatpush1.bf16.msra.mxu0 %v3003_v12  ;;  %3032 = vmatpush3.bf16.msra.mxu1 %v3029_v9  ;;  %v4213_v9 = vpack.c.bf16 %v703_v61, %v700_v60  ;;  %v4220_v12 = vpack.c.bf16 %v713_v4, %v710_v3  ;;  %v712_v25 = vld [vmem:[%s4107_s18 + $0x100] sm:$0xff]  ;;  %v715_v27 = vld [vmem:[%s4107_s18 + $0x118] sm:$0xff]  ;;  %v4255_v33 = vpack.c.bf16 %v726_v23, %v723_v22  ;;  %v722_v34 = vld [vmem:[%s4107_s18 + $0x150] sm:$0xff]  ;;  %v2047_v60 = vstv %s1874_s11  ;;  %s2484_s11 = smul.u32 40, %s3938_s16 }
  0x99   : > { %3038 = vmatprep.subr.bf16.mxu0 %v4114_v13  ;;  %3034 = vmatprep.subr.bf16.mxu1 %v3033_v18  ;;  %v725_v35 = vld [vmem:[%s4107_s18 + $0x168] sm:$0xff]  ;;  %v4262_v36 = vpack.c.bf16 %v715_v27, %v712_v25  ;;  %v2449_v61 = vsel %vm1856_vm6, 1.0, %v3810_v0  ;;  %vm2048_vm7 = vcmp.lt.s32.totalorder %v2047_v60, %v4132_v26  ;;  %v412_v8 = vshrl.u32 %v411_v7, 7 }
  0x9a   : > { %v2454_v3 = vsel %vm2048_vm7, 1.0, %v3810_v0  ;;  %v1865_v4 = vsub.f32 1.0, %v2449_v61  ;;  %s2466_s29 = sadd.s32 8, %s2484_s11  ;;  %s2440_s11 = sshll.u32 %s1490_s3, 3 }
  0x9b   : > { %491 = vmatmul.mubr.f32.vlgmr.msra.gmra.mrb[0].mxu0 %v4086_v45  ;;  %v701_v45 = vld [vmem:[%s4107_s18 + $0xa8] sm:$0xff]  ;;  %1478 = vperm.xlu0 %3561, %v2439_v50   ;;  %v413_v10 = vsub.s32 0, %v412_v8  ;;  %v417_v14 = vsub.s32 1, %v412_v8  ;;  %s2486_s3 = smul.u32 4294967272, %s3938_s16 }
  0x9c   : > { %496 = vmatprep.mubr.f32.mxu0 %v3810_v0  ;;  %3040 = vmatpush1.bf16.msra.mxu0 %v4120_v19  ;;  %v4178_v52 = vpack.c.bf16 %v701_v45, %v698_v44  ;;  %v721_v44 = vld [vmem:[%s4107_s18 + $0x148] sm:$0xff]  ;;  %v4271_v45 = vpack.c.bf16 %v725_v35, %v722_v34 }
  0x9d   : > { %3042 = vmatprep.subr.bf16.mxu0 %v4123_v21  ;;  %3036 = vmatpush3.bf16.msra.mxu1 %v3033_v18  ;;  %v719_v18 = vld [vmem:[%s4107_s18 + $0x138] sm:$0xff] }
  0x9e   : > { %3069 = vmatprep.subr.bf16.mxu1 %v3812_v37  ;;  %1485 = vperm.xlu1 %3562, %v1482_v57  }
  0x9f   : > { %497 = vmatmul.mubr.f32.gmra.mrb[2].mxu0 %v354_v29  ;;  %1669 = vperm.xlu0 %3561, %v2444_v58  }
  0xa0   : > { %502 = vmatprep.mubr.f32.mxu0 %v3810_v0  ;;  %3044 = vmatpush1.bf16.msra.mxu0 %v4140_v30 }
  0xa1   : > { %3046 = vmatprep.subr.bf16.mxu0 %v4146_v32  ;;  %2682 = vmatmul.mubr.f32.vlgmr.msra.gmra.mrb[0].mxu1 %v354_v29  ;;  %v4252_v29 = vpack.c.bf16 %v719_v18, %v716_v17  ;;  %v421_v18 = vsub.s32 2, %v412_v8 }
  0xa2   : > { %2684 = vmatprep.mubr.f32.mxu1 %v355_v41  ;;  %3071 = vmatpush3.bf16.msra.mxu1 %v4153_v38 }
  0xa3   : > { %503 = vmatmul.mubr.f32.gmra.mrb[4].mxu0 %v355_v41  ;;  %3072 = vmatprep.subr.bf16.mxu1 %v3812_v37  ;;  %v718_v41 = vld [vmem:[%s4107_s18 + $0x130] sm:$0xff] }
  0xa4   : > { %508 = vmatprep.mubr.f32.mxu0 %v3810_v0  ;;  %3048 = vmatpush1.bf16.msra.mxu0 %v4160_v42  ;;  %v4278_v47 = vpack.c.bf16 %v721_v44, %v718_v41 }
  0xa5   : > { %3050 = vmatprep.subr.bf16.mxu0 %v4163_v43  ;;  %2685 = vmatmul.mubr.f32.gmra.mrb[2].mxu1 %v356_v51 }
  0xa6   : > { %2687 = vmatprep.mubr.f32.mxu1 %v357_v53  ;;  %3074 = vmatpush3.bf16.msra.mxu1 %v4170_v48 }
  0xa7   : > { %509 = vmatmul.mubr.f32.gmra.mrb[6].mxu0 %v356_v51  ;;  %3075 = vmatprep.subr.bf16.mxu1 %v3812_v37  ;;  %v724_v51 = vld [vmem:[%s4107_s18 + $0x160] sm:$0xff] }
  0xa8   : > { %514 = vmatprep.mubr.f32.mxu0 %v3810_v0  ;;  %3052 = vmatpush1.bf16.msra.mxu0 %v4178_v52 }
  0xa9   : > { %3054 = vmatprep.subr.bf16.mxu0 %v4181_v54  ;;  %2688 = vmatmul.mubr.f32.gmra.mrb[4].mxu1 %v358_v62 }
  0xaa   : > { %2690 = vmatprep.mubr.f32.mxu1 %v359_v1  ;;  %3077 = vmatpush3.bf16.msra.mxu1 %v4189_v59 }
  0xab   : > { %515 = vmatmul.mubr.f32.gmra.mrb[8].mxu0 %v357_v53  ;;  %3078 = vmatprep.subr.bf16.mxu1 %v3812_v37  ;;  %v727_v53 = vld [vmem:[%s4107_s18 + $0x178] sm:$0xff]  ;;  %s4342_s18 = scalar_select %p346_p9, %s3938_s16, 1 }
  0xac   : > { %520 = vmatprep.mubr.f32.mxu0 %v3810_v0  ;;  %3056 = vmatpush1.bf16.msra.mxu0 %v4198_v63  ;;  %v4291_v56 = vpack.c.bf16 %v727_v53, %v724_v51 }
  0xad   : > { %3058 = vmatprep.subr.bf16.mxu0 %v4201_v2  ;;  %2691 = vmatmul.mubr.f32.gmra.mrb[6].mxu1 %v4208_v6  ;;  %s3490_s19 = smul.u32 3, %s4342_s18  ;;  %s352_s13 = scalar_lea.vmem %s4689_s5, %s4342_s18 }
  0xae   : > { %3080 = vmatpush3.bf16.msra.mxu1 %v4213_v9  ;;  %2725 = vmatprep.mubr.msk.f32.mxu1 %vm3813_vm2, %v3810_v0 }
  0xaf   : > { %521 = vmatmul.mubr.f32.gmra.mrb[10].mxu0 %v358_v62  ;;  %3081 = vmatprep.subr.bf16.mxu1 %v3812_v37  ;;  %v1673_v62 = vsub.f32 1.0, %v2444_v58  ;;  %s349_s27 = scalar_lea.vmem %s4688_s4, %s3490_s19 }
  0xb0   : > { %526 = vmatprep.mubr.f32.mxu0 %v3810_v0  ;;  %3060 = vmatpush1.bf16.msra.mxu0 %v4220_v12  ;;  %v409_v11 = vld [vmem:[%s349_s27] sm:$0x7]  ;;  %s1110_s27 = sshra.s32 %s2469_s9, 3 }
  0xb1   : > { %3062 = vmatprep.subr.bf16.mxu0 %v4230_v16  ;;  %1861 = vperm.xlu0 %3561, %v2449_v61   ;;  %v4348_v15 = vrot.slane %v409_v11, %v413_v10  ;;  %v4350_v17 = vrot.slane %v409_v11, %v417_v14  ;;  %v422_v27 = vrot.slane %v409_v11, %v421_v18  ;;  %s2470_s8 = smul.u32 24, %s1110_s27 }
  0xb2   : > { %3083 = vmatpush3.bf16.msra.mxu1 %v4239_v24  ;;  %1676 = vperm.xlu1 %3562, %v1673_v62  }
  0xb3   : > { %527 = vmatmul.mubr.f32.gmra.mrb[12].mxu0 %v359_v1  ;;  %3084 = vmatprep.subr.bf16.mxu1 %v3812_v37  ;;  %v2239_v1 = vstv %s2066_s26  ;;  %s918_s26 = sshra.s32 %s2466_s29, 3  ;;  %s1114_s10 = scalar_lea.vmem [#allocation2], %s2470_s8 }
  0xb4   : > { %532 = vmatprep.mubr.f32.mxu0 %v3810_v0  ;;  %3064 = vmatpush1.bf16.msra.mxu0 %v4252_v29  ;;  %vm2240_vm8 = vcmp.lt.s32.totalorder %v2239_v1, %v4132_v26  ;;  %s2467_s18 = smul.u32 24, %s918_s26  ;;  %s1492_s29 = sshra.s32 %s2440_s11, 3 }
  0xb5   : > { %3066 = vmatprep.subr.bf16.mxu0 %v4255_v33  ;;  %2053 = vperm.xlu0 %3561, %v2454_v3   ;;  %v2459_v5 = vsel %vm2240_vm8, 1.0, %v3810_v0  ;;  %s2474_s26 = smul.u32 24, %s1492_s29 }
  0xb6   : > { %3086 = vmatpush3.bf16.msra.mxu1 %v4262_v36  ;;  %1868 = vperm.xlu1 %3562, %v1865_v4   ;;  %v2249_v26 = vsub.f32 1.0, %v2459_v5  ;;  %s922_s19 = scalar_lea.vmem [#allocation2], %s2467_s18  ;;  %s2487_s8 = smul.u32 4294967256, %s3938_s16 }
  0xb7   : > { %533 = vmatmul.mubr.f32.gmra.mrb[14].mxu0 %v4208_v6  ;;  %3087 = vmatprep.subr.bf16.mxu1 %v3812_v37  ;;  %v2057_v6 = vsub.f32 1.0, %v2454_v3  ;;  %s1496_s18 = scalar_lea.vmem [#allocation2], %s2474_s26 }
  0xb8   : > { %3068 = vmatpush1.bf16.msra.mxu0 %v4271_v45  ;;  %792 = vmatprep.mubr.f32.mxu0 %v3810_v0 }
  0xb9   : > { %3094 = vmatprep.subr.bf16.mxu0 %v4114_v13  ;;  %2245 = vperm.xlu0 %3561, %v2459_v5  }
  0xba   : > { %3089 = vmatpush3.bf16.msra.mxu1 %v4278_v47  ;;  %2060 = vperm.xlu1 %3562, %v2057_v6  }
  0xbb   : > { %793 = vmatmul.mubr.f32.vlgmr.msra.gmra.mrb[16].mxu0 %v3810_v0  ;;  %3090 = vmatprep.subr.bf16.mxu1 %v3812_v37 }
  0xbc   : > { %3096 = vmatpush1.bf16.msra.mxu0 %v4120_v19  ;;  %990 = vmatprep.mubr.f32.mxu0 %v3810_v0 }
  0xbd   : > { %3098 = vmatprep.subr.bf16.mxu0 %v4123_v21 }
  0xbe   : > { %3092 = vmatpush3.bf16.msra.mxu1 %v4291_v56  ;;  %2252 = vperm.xlu1 %3562, %v2249_v26  }
  0xbf   : > { %3125 = vmatprep.subr.bf16.mxu1 %v3812_v37 }
  0xc0   : > { %3100 = vmatpush1.bf16.msra.mxu0 %v4140_v30 }
  0xc1   : > { %2726 = vmatmul.mubr.f32.vlgmr.msra.gmra.mrb[8].mxu1 %v3810_v0  ;;  %3102 = vmatprep.subr.bf16.mxu0 %v4146_v32 }
  0xc2   : > { %3127 = vmatpush3.bf16.msra.mxu1 %v4153_v38  ;;  %2760 = vmatprep.mubr.msk.f32.mxu1 %vm3813_vm2, %v3810_v0 }
  0xc3   : > { %3128 = vmatprep.subr.bf16.mxu1 %v3812_v37 }
  0xc4   : > { %3104 = vmatpush1.bf16.msra.mxu0 %v4160_v42 }
  0xc5   : > { %3106 = vmatprep.subr.bf16.mxu0 %v4163_v43 }
  0xc6   : > { %3130 = vmatpush3.bf16.msra.mxu1 %v4170_v48 }
  0xc7   : > { %3131 = vmatprep.subr.bf16.mxu1 %v3812_v37 }
  0xc8   : > { %3108 = vmatpush1.bf16.msra.mxu0 %v4178_v52 }
  0xc9   : > { %3110 = vmatprep.subr.bf16.mxu0 %v4181_v54 }
  0xca   : > { %3133 = vmatpush3.bf16.msra.mxu1 %v4189_v59 }
  0xcb   : > { %3134 = vmatprep.subr.bf16.mxu1 %v3812_v37 }
  0xcc   : > { %3112 = vmatpush1.bf16.msra.mxu0 %v4198_v63 }
  0xcd   : > { %3114 = vmatprep.subr.bf16.mxu0 %v4201_v2 }
  0xce   : > { %3136 = vmatpush3.bf16.msra.mxu1 %v4213_v9 }
  0xcf   : > { %3137 = vmatprep.subr.bf16.mxu1 %v3812_v37 }
  0xd0   : > { %3116 = vmatpush1.bf16.msra.mxu0 %v4220_v12 }
  0xd1   : > { %3118 = vmatprep.subr.bf16.mxu0 %v4230_v16 }
  0xd2   : > { %3139 = vmatpush3.bf16.msra.mxu1 %v4239_v24 }
  0xd3   : > { %3140 = vmatprep.subr.bf16.mxu1 %v3812_v37 }
  0xd4   : > { %3120 = vmatpush1.bf16.msra.mxu0 %v4252_v29 }
  0xd5   : > { %3122 = vmatprep.subr.bf16.mxu0 %v4255_v33 }
  0xd6   : > { %3142 = vmatpush3.bf16.msra.mxu1 %v4262_v36 }
  0xd7   : > { %3143 = vmatprep.subr.bf16.mxu1 %v3812_v37 }
  0xd8   : > { %3124 = vmatpush1.bf16.msra.mxu0 %v4271_v45 }
  0xd9   : > { %3150 = vmatprep.subr.bf16.mxu0 %v4114_v13 }
  0xda   : > { %3145 = vmatpush3.bf16.msra.mxu1 %v4278_v47 }
  0xdb   : > { %3146 = vmatprep.subr.bf16.mxu1 %v3812_v37 }
  0xde   : > { %3148 = vmatpush3.bf16.msra.mxu1 %v4291_v56 }
  0xdf   : > { %3181 = vmatprep.subr.bf16.mxu1 %v3812_v37 }
 0x16e   : > { %v492_v20 = vpop.f32.mrb[0].mxu0 }
 0x16f   : > { %v493_v22 = vadd.f32 %v492_v20, %v4348_v15  ;;  %v494_v23 = vpop.f32.mrb[1].mxu0 }
 0x170   : > { %v495_v25 = vadd.f32 %v494_v23, %v4350_v17 }
 0x171   : > { %644 = vst [vmem:[#allocation2] sm:$0xff] %v493_v22 }
 0x172   : > { %645 = vst [vmem:[#allocation2 + $0x8] sm:$0xff] %v495_v25  ;;  %v498_v28 = vpop.f32.mrb[2].mxu0 }
 0x173   : > { %v499_v31 = vadd.f32 %v498_v28, %v4348_v15  ;;  %v500_v34 = vpop.f32.mrb[3].mxu0 }
 0x174   : > { %v501_v35 = vadd.f32 %v500_v34, %v4350_v17  ;;  %v2683_v39 = vpop.f32.mrb[0].mxu1 }
 0x175   : > { %647 = vst [vmem:[#allocation2 + $0x18] sm:$0xff] %v499_v31  ;;  %v611_v40 = vadd.f32 %v2683_v39, %v422_v27  ;;  %v605_v41 = vpop.f32.mrb[1].mxu1 }
 0x176   : > { %648 = vst [vmem:[#allocation2 + $0x20] sm:$0xff] %v501_v35  ;;  %v504_v44 = vpop.f32.mrb[4].mxu0  ;;  %v606_v46 = vadd.f32 %v605_v41, %v422_v27 }
 0x177   : > { %v505_v49 = vadd.f32 %v504_v44, %v4348_v15  ;;  %v506_v50 = vpop.f32.mrb[5].mxu0  ;;  %649 = vst [vmem:[#allocation2 + $0x28] sm:$0xff] %v611_v40 }
 0x178   : > { %v507_v51 = vadd.f32 %v506_v50, %v4350_v17  ;;  %646 = vst [vmem:[#allocation2 + $0x10] sm:$0xff] %v606_v46  ;;  %v2686_v53 = vpop.f32.mrb[2].mxu1 }
 0x179   : > { %650 = vst [vmem:[#allocation2 + $0x30] sm:$0xff] %v505_v49  ;;  %v621_v55 = vadd.f32 %v2686_v53, %v422_v27  ;;  %v615_v57 = vpop.f32.mrb[3].mxu1 }
 0x17a   : > { %651 = vst [vmem:[#allocation2 + $0x38] sm:$0xff] %v507_v51  ;;  %v510_v58 = vpop.f32.mrb[6].mxu0  ;;  %v616_v60 = vadd.f32 %v615_v57, %v422_v27 }
 0x17b   : > { %v511_v61 = vadd.f32 %v510_v58, %v4348_v15  ;;  %v512_v62 = vpop.f32.mrb[7].mxu0  ;;  %655 = vst [vmem:[#allocation2 + $0x58] sm:$0xff] %v621_v55 }
 0x17c   : > { %v513_v1 = vadd.f32 %v512_v62, %v4350_v17  ;;  %652 = vst [vmem:[#allocation2 + $0x40] sm:$0xff] %v616_v60  ;;  %v2689_v3 = vpop.f32.mrb[4].mxu1 }
 0x17d   : > { %653 = vst [vmem:[#allocation2 + $0x48] sm:$0xff] %v511_v61  ;;  %v631_v4 = vadd.f32 %v2689_v3, %v422_v27  ;;  %v625_v5 = vpop.f32.mrb[5].mxu1 }
 0x17e   : > { %654 = vst [vmem:[#allocation2 + $0x50] sm:$0xff] %v513_v1  ;;  %v516_v6 = vpop.f32.mrb[8].mxu0  ;;  %v626_v26 = vadd.f32 %v625_v5, %v422_v27  ;;  %v4373_v1 = vld [vmem:[%s352_s13] ss:$0 sm:$0xff] }
 0x17f   : > { %v517_v7 = vadd.f32 %v516_v6, %v4348_v15  ;;  %v518_v8 = vpop.f32.mrb[9].mxu0  ;;  %661 = vst [vmem:[#allocation2 + $0x88] sm:$0xff] %v631_v4 }
 0x180   : > { %v519_v10 = vadd.f32 %v518_v8, %v4350_v17  ;;  %658 = vst [vmem:[#allocation2 + $0x70] sm:$0xff] %v626_v26  ;;  %v2692_v11 = vpop.f32.mrb[6].mxu1 }
 0x181   : > { %656 = vst [vmem:[#allocation2 + $0x60] sm:$0xff] %v517_v7  ;;  %v641_v14 = vadd.f32 %v2692_v11, %v422_v27  ;;  %v635_v18 = vpop.f32.mrb[7].mxu1 }
 0x182   : > { %657 = vst [vmem:[#allocation2 + $0x68] sm:$0xff] %v519_v10  ;;  %v522_v20 = vpop.f32.mrb[10].mxu0  ;;  %v636_v22 = vadd.f32 %v635_v18, %v422_v27  ;;  %v904_v10 = vpop.permute.xlu0 %903 }
 0x183   : > { %v523_v23 = vadd.f32 %v522_v20, %v4348_v15  ;;  %v524_v25 = vpop.f32.mrb[11].mxu0  ;;  %667 = vst [vmem:[#allocation2 + $0xb8] sm:$0xff] %v641_v14 }
 0x184   : > { %v525_v28 = vadd.f32 %v524_v25, %v4350_v17  ;;  %664 = vst [vmem:[#allocation2 + $0xa0] sm:$0xff] %v636_v22 }
 0x185   : > { %659 = vst [vmem:[#allocation2 + $0x78] sm:$0xff] %v523_v23 }
 0x186   : > { %660 = vst [vmem:[#allocation2 + $0x80] sm:$0xff] %v525_v28  ;;  %v528_v31 = vpop.f32.mrb[12].mxu0  ;;  %v911_v23 = vpop.permute.xlu0 %910 }
 0x187   : > { %v529_v34 = vadd.f32 %v528_v31, %v4348_v15  ;;  %v530_v35 = vpop.f32.mrb[13].mxu0  ;;  %v913_v25 = vmul.f32 0.0, %v911_v23 }
 0x188   : > { %v531_v39 = vadd.f32 %v530_v35, %v4350_v17 }
 0x189   : > { %662 = vst [vmem:[#allocation2 + $0x90] sm:$0xff] %v529_v34 }
 0x18a   : > { %663 = vst [vmem:[#allocation2 + $0x98] sm:$0xff] %v531_v39  ;;  %v534_v40 = vpop.f32.mrb[14].mxu0 }
 0x18b   : > { %v535_v27 = vadd.f32 %v534_v40, %v4348_v15  ;;  %v536_v41 = vpop.f32.mrb[15].mxu0 }
 0x18c   : > { %v537_v44 = vadd.f32 %v536_v41, %v4350_v17 }
 0x18d   : > { %665 = vst [vmem:[#allocation2 + $0xa8] sm:$0xff] %v535_v27 }
 0x18e   : > { %666 = vst [vmem:[#allocation2 + $0xb0] sm:$0xff] %v537_v44  ;;  %v794_v46 = vpop.f32.mrb[16].mxu0 }
 0x18f   : > { %v796_v49 = vpop.f32.mrb[17].mxu0 }
 0x194   : > { %v865_v50 = vpop.f32.mrb[8].mxu1 }
 0x195   : > { %v677_v51 = vld [vmem:[%s676_s2] sm:$0xff]  ;;  %v2727_v53 = vpop.f32.mrb[9].mxu1  ;;  %v678_v57 = vld [vmem:[%s676_s2 + $0x8] sm:$0xff]  ;;  %v889_v4 = vadd.f32 %v4373_v1, %v865_v50  ;;  %v679_v26 = vld [vmem:[%s676_s2 + $0x10] sm:$0xff]  ;;  %s2472_s2 = sadd.s32 24, %s2471_s15 }
 0x196   : > { %v869_v55 = vadd.f32 %v794_v46, %v677_v51  ;;  %v876_v60 = vadd.f32 %v796_v49, %v678_v57  ;;  %v923_v34 = vld [vmem:[%s922_s19] sm:$0xff]  ;;  %v924_v46 = vld [vmem:[%s922_s19 + $0x8] sm:$0xff]  ;;  %s1301_s30 = sshra.s32 %s2472_s2, 3 }
 0x197   : > { %s2473_s17 = smul.u32 24, %s1301_s30 }
 0x198   : > { %v2421_v58 = vmul.f32 -1.442695, %v869_v55  ;;  %v2422_v15 = vmul.f32 -1.442695, %v876_v60 }
 0x199   : > { %s1305_s13 = scalar_lea.vmem [#allocation2], %s2473_s17  ;;  %s2488_s17 = smul.u32 4294967240, %s3938_s16 }
 0x19a   : > { %3563 = vpow2.f32 %v2421_v58 }
 0x19b   : > { %3565 = vpow2.f32 %v2422_v15 }
 0x1a4   : > { %v3564_v61 = vpop.eup %3563 }
 0x1a5   : > { %v873_v62 = vadd.f32 1.0, %v3564_v61  ;;  %v3566_v17 = vpop.eup %3565  ;;  %v925_v61 = vld [vmem:[%s922_s19 + $0x10] sm:$0xff]  ;;  %s2476_s19 = sadd.s32 40, %s2486_s3  ;;  %s2461_s3 = sshll.u32 %s3938_s16, 7 }
 0x1a6   : > { %v880_v3 = vadd.f32 1.0, %v3566_v17  ;;  %s1684_s7 = sshra.s32 %s2476_s19, 3  ;;  %s3814_s16 = smov [#allocation9]  }
 0x1a7   : > { %3567 = vrcp.f32 %v873_v62  ;;  %s2477_s9 = smul.u32 24, %s1684_s7 }
 0x1a8   : > { %3569 = vrcp.f32 %v880_v3  ;;  %v1096_v3 = vpop.permute.xlu1 %1095 }
 0x1a9   : > { %s1688_s27 = scalar_lea.vmem [#allocation2], %s2477_s9 }
 0x1b1   : > { %v3568_v5 = vpop.eup %3567 }
 0x1b2   : > { %v890_v6 = vmul.f32 %v3568_v5, %v889_v4  ;;  %v3570_v8 = vpop.eup %3569 }
 0x1b3   : > { %v893_v11 = vsub.f32 1.0, %v3570_v8  ;;  %v895_v20 = vmul.f32 0.0, %v3570_v8 }
 0x1b4   : > { %v891_v7 = vadd.f32 %v890_v6, %v679_v26 }
 0x1b6   : > { %3571 = vtanh.f32 %v891_v7  ;;  %v1103_v7 = vpop.permute.xlu1 %1102 }
 0x1c0   : > { %v3572_v14 = vpop.eup %3571 }
 0x1c1   : > { %v894_v18 = vmul.f32 %v3572_v14, %v893_v11 }
 0x1c3   : > { %v896_v22 = vadd.f32 %v895_v20, %v894_v18  ;;  %v1115_v18 = vld [vmem:[%s1114_s10] sm:$0xff] }
 0x1c5   : > { %v906_v28 = vmul.f32 %v904_v10, %v896_v22 }
 0x1c7   : > { %v4376_v31 = vadd.f32 %v913_v25, %v906_v28 }
 0x1c9   : > { %991 = vmatmul.mubr.f32.vlgmr.msra.gmra.mrb[18].mxu0 %v4376_v31  ;;  %2761 = vmatmul.mubr.f32.vlgmr.msra.gmra.mrb[10].mxu1 %v4376_v31  ;;  %v1105_v10 = vmul.f32 %v1103_v7, %v4376_v31 }
 0x1ca   : > { %3152 = vmatpush1.bf16.msra.mxu0 %v4120_v19  ;;  %3183 = vmatpush3.bf16.msra.mxu1 %v4153_v38 }
 0x1cb   : > { %3154 = vmatprep.subr.bf16.mxu0 %v4123_v21  ;;  %3184 = vmatprep.subr.bf16.mxu1 %v3812_v37 }
 0x1cc   : > { %1182 = vmatprep.mubr.f32.mxu0 %v3810_v0  ;;  %2795 = vmatprep.mubr.msk.f32.mxu1 %vm3813_vm2, %v3810_v0 }
 0x1ce   : > { %3156 = vmatpush1.bf16.msra.mxu0 %v4140_v30  ;;  %3186 = vmatpush3.bf16.msra.mxu1 %v4170_v48 }
 0x1cf   : > { %3158 = vmatprep.subr.bf16.mxu0 %v4146_v32  ;;  %3187 = vmatprep.subr.bf16.mxu1 %v3812_v37 }
 0x1d2   : > { %3160 = vmatpush1.bf16.msra.mxu0 %v4160_v42  ;;  %3189 = vmatpush3.bf16.msra.mxu1 %v4189_v59 }
 0x1d3   : > { %3162 = vmatprep.subr.bf16.mxu0 %v4163_v43  ;;  %3190 = vmatprep.subr.bf16.mxu1 %v3812_v37 }
 0x1d6   : > { %3164 = vmatpush1.bf16.msra.mxu0 %v4178_v52  ;;  %3192 = vmatpush3.bf16.msra.mxu1 %v4213_v9 }
 0x1d7   : > { %3166 = vmatprep.subr.bf16.mxu0 %v4181_v54  ;;  %3193 = vmatprep.subr.bf16.mxu1 %v3812_v37 }
 0x1da   : > { %3168 = vmatpush1.bf16.msra.mxu0 %v4198_v63  ;;  %3195 = vmatpush3.bf16.msra.mxu1 %v4239_v24 }
 0x1db   : > { %3170 = vmatprep.subr.bf16.mxu0 %v4201_v2  ;;  %3196 = vmatprep.subr.bf16.mxu1 %v3812_v37 }
 0x1de   : > { %3172 = vmatpush1.bf16.msra.mxu0 %v4220_v12  ;;  %3198 = vmatpush3.bf16.msra.mxu1 %v4262_v36 }
 0x1df   : > { %3174 = vmatprep.subr.bf16.mxu0 %v4230_v16  ;;  %3199 = vmatprep.subr.bf16.mxu1 %v3812_v37 }
 0x1e2   : > { %3176 = vmatpush1.bf16.msra.mxu0 %v4252_v29  ;;  %3201 = vmatpush3.bf16.msra.mxu1 %v4278_v47 }
 0x1e3   : > { %3178 = vmatprep.subr.bf16.mxu0 %v4255_v33  ;;  %3202 = vmatprep.subr.bf16.mxu1 %v3812_v37 }
 0x1e6   : > { %3180 = vmatpush1.bf16.msra.mxu0 %v4271_v45  ;;  %3204 = vmatpush3.bf16.msra.mxu1 %v4291_v56 }
 0x1e7   : > { %3206 = vmatprep.subr.bf16.mxu0 %v4114_v13  ;;  %3237 = vmatprep.subr.bf16.mxu1 %v3812_v37 }
 0x29c   : > { %v992_v35 = vpop.f32.mrb[18].mxu0  ;;  %v1063_v39 = vpop.f32.mrb[10].mxu1 }
 0x29d   : > { %v1067_v40 = vadd.f32 %v992_v35, %v923_v34  ;;  %v994_v27 = vpop.f32.mrb[19].mxu0  ;;  %v2762_v41 = vpop.f32.mrb[11].mxu1  ;;  %v1081_v58 = vadd.f32 %v4373_v1, %v1063_v39  ;;  %v1116_v34 = vld [vmem:[%s1114_s10 + $0x8] sm:$0xff] }
 0x29e   : > { %v1074_v49 = vadd.f32 %v994_v27, %v924_v46 }
 0x29f   : > { %v2427_v44 = vmul.f32 -1.442695, %v1067_v40 }
 0x2a0   : > { %v2428_v50 = vmul.f32 -1.442695, %v1074_v49 }
 0x2a1   : > { %3573 = vpow2.f32 %v2427_v44 }
 0x2a2   : > { %3575 = vpow2.f32 %v2428_v50 }
 0x2ab   : > { %v3574_v51 = vpop.eup %3573 }
 0x2ac   : > { %v1071_v53 = vadd.f32 1.0, %v3574_v51  ;;  %v3576_v55 = vpop.eup %3575  ;;  %v1117_v51 = vld [vmem:[%s1114_s10 + $0x10] sm:$0xff]  ;;  %s2479_s10 = sadd.s32 48, %s2487_s8  ;;  %s4640_s8 = scalar_lea.hbm %s4690_s6, %s2461_s3 }
 0x2ad   : > { %v1078_v57 = vadd.f32 1.0, %v3576_v55  ;;  %s1876_s15 = sshra.s32 %s2479_s10, 3  ;;  %s2259_s10 = scalar_lea.sflag [#allocation5], %s4044_s20 }
 0x2ae   : > { %3577 = vrcp.f32 %v1071_v53  ;;  %s2480_s2 = smul.u32 24, %s1876_s15 }
 0x2af   : > { %3579 = vrcp.f32 %v1078_v57 }
 0x2b0   : > { %s1880_s30 = scalar_lea.vmem [#allocation2], %s2480_s2  ;;  %s3735_s2 = sshll.u32 %s3814_s16, 4  ;;  %s3736_s2 = int_to_ptr.vmem [resolvable:$false] %s3735_s2 }
 0x2b8   : > { %v3578_v60 = vpop.eup %3577 }
 0x2b9   : > { %v1082_v15 = vmul.f32 %v3578_v60, %v1081_v58  ;;  %v3580_v17 = vpop.eup %3579 }
 0x2ba   : > { %v1085_v4 = vsub.f32 1.0, %v3580_v17  ;;  %v1087_v26 = vmul.f32 %v3580_v17, %v4376_v31  ;;  %v1295_v17 = vpop.permute.xlu1 %1294 }
 0x2bb   : > { %v1083_v62 = vadd.f32 %v1082_v15, %v925_v61 }
 0x2bd   : > { %3581 = vtanh.f32 %v1083_v62  ;;  %v1288_v62 = vpop.permute.xlu0 %1287 }
 0x2c7   : > { %v3582_v5 = vpop.eup %3581 }
 0x2c8   : > { %v1086_v6 = vmul.f32 %v3582_v5, %v1085_v4 }
 0x2ca   : > { %v1088_v8 = vadd.f32 %v1087_v26, %v1086_v6  ;;  %v1306_v6 = vld [vmem:[%s1305_s13] sm:$0xff] }
 0x2cc   : > { %v1098_v11 = vmul.f32 %v1096_v3, %v1088_v8 }
 0x2ce   : > { %v4419_v14 = vadd.f32 %v1105_v10, %v1098_v11 }
 0x2d0   : > { %1183 = vmatmul.mubr.f32.vlgmr.msra.gmra.mrb[20].mxu0 %v4419_v14  ;;  %2796 = vmatmul.mubr.f32.vlgmr.msra.gmra.mrb[12].mxu1 %v4419_v14  ;;  %v1297_v3 = vmul.f32 %v1295_v17, %v4419_v14 }
 0x2d1   : > { %3208 = vmatpush1.bf16.msra.mxu0 %v4120_v19  ;;  %3239 = vmatpush3.bf16.msra.mxu1 %v4153_v38 }
 0x2d2   : > { %3210 = vmatprep.subr.bf16.mxu0 %v4123_v21  ;;  %3240 = vmatprep.subr.bf16.mxu1 %v3812_v37 }
 0x2d3   : > { %1373 = vmatprep.mubr.f32.mxu0 %v3810_v0  ;;  %2830 = vmatprep.mubr.msk.f32.mxu1 %vm3813_vm2, %v3810_v0 }
 0x2d5   : > { %3212 = vmatpush1.bf16.msra.mxu0 %v4140_v30  ;;  %3242 = vmatpush3.bf16.msra.mxu1 %v4170_v48 }
 0x2d6   : > { %3214 = vmatprep.subr.bf16.mxu0 %v4146_v32  ;;  %3243 = vmatprep.subr.bf16.mxu1 %v3812_v37 }
 0x2d9   : > { %3216 = vmatpush1.bf16.msra.mxu0 %v4160_v42  ;;  %3245 = vmatpush3.bf16.msra.mxu1 %v4189_v59 }
 0x2da   : > { %3218 = vmatprep.subr.bf16.mxu0 %v4163_v43  ;;  %3246 = vmatprep.subr.bf16.mxu1 %v3812_v37 }
 0x2dd   : > { %3220 = vmatpush1.bf16.msra.mxu0 %v4178_v52  ;;  %3248 = vmatpush3.bf16.msra.mxu1 %v4213_v9 }
 0x2de   : > { %3222 = vmatprep.subr.bf16.mxu0 %v4181_v54  ;;  %3249 = vmatprep.subr.bf16.mxu1 %v3812_v37 }
 0x2e1   : > { %3224 = vmatpush1.bf16.msra.mxu0 %v4198_v63  ;;  %3251 = vmatpush3.bf16.msra.mxu1 %v4239_v24 }
 0x2e2   : > { %3226 = vmatprep.subr.bf16.mxu0 %v4201_v2  ;;  %3252 = vmatprep.subr.bf16.mxu1 %v3812_v37 }
 0x2e5   : > { %3228 = vmatpush1.bf16.msra.mxu0 %v4220_v12  ;;  %3254 = vmatpush3.bf16.msra.mxu1 %v4262_v36 }
 0x2e6   : > { %3230 = vmatprep.subr.bf16.mxu0 %v4230_v16  ;;  %3255 = vmatprep.subr.bf16.mxu1 %v3812_v37 }
 0x2e9   : > { %3232 = vmatpush1.bf16.msra.mxu0 %v4252_v29  ;;  %3257 = vmatpush3.bf16.msra.mxu1 %v4278_v47 }
 0x2ea   : > { %3234 = vmatprep.subr.bf16.mxu0 %v4255_v33  ;;  %3258 = vmatprep.subr.bf16.mxu1 %v3812_v37 }
 0x2ed   : > { %3236 = vmatpush1.bf16.msra.mxu0 %v4271_v45  ;;  %3260 = vmatpush3.bf16.msra.mxu1 %v4291_v56 }
 0x2ee   : > { %3262 = vmatprep.subr.bf16.mxu0 %v4114_v13  ;;  %3293 = vmatprep.subr.bf16.mxu1 %v3812_v37 }
 0x3a3   : > { %v1184_v20 = vpop.f32.mrb[20].mxu0  ;;  %v1255_v22 = vpop.f32.mrb[12].mxu1 }
 0x3a4   : > { %v1259_v23 = vadd.f32 %v1184_v20, %v1115_v18  ;;  %v1186_v25 = vpop.f32.mrb[21].mxu0  ;;  %v2797_v28 = vpop.f32.mrb[13].mxu1  ;;  %v1273_v46 = vadd.f32 %v4373_v1, %v1255_v22  ;;  %v1307_v18 = vld [vmem:[%s1305_s13 + $0x8] sm:$0xff] }
 0x3a5   : > { %v1266_v35 = vadd.f32 %v1186_v25, %v1116_v34 }
 0x3a6   : > { %v2432_v31 = vmul.f32 -1.442695, %v1259_v23 }
 0x3a7   : > { %v2433_v39 = vmul.f32 -1.442695, %v1266_v35 }
 0x3a8   : > { %3583 = vpow2.f32 %v2432_v31 }
 0x3a9   : > { %3585 = vpow2.f32 %v2433_v39 }
 0x3b2   : > { %v3584_v40 = vpop.eup %3583 }
 0x3b3   : > { %v1263_v27 = vadd.f32 1.0, %v3584_v40  ;;  %v3586_v41 = vpop.eup %3585  ;;  %v1308_v40 = vld [vmem:[%s1305_s13 + $0x10] sm:$0xff]  ;;  %s2482_s13 = sadd.s32 56, %s2488_s17 }
 0x3b4   : > { %v1270_v44 = vadd.f32 1.0, %v3586_v41  ;;  %s2068_s11 = sshra.s32 %s2482_s13, 3 }
 0x3b5   : > { %3587 = vrcp.f32 %v1263_v27  ;;  %s2483_s29 = smul.u32 24, %s2068_s11 }
 0x3b6   : > { %3589 = vrcp.f32 %v1270_v44 }
 0x3b7   : > { %s2072_s26 = scalar_lea.vmem [#allocation2], %s2483_s29 }
 0x3bf   : > { %v3588_v49 = vpop.eup %3587 }
 0x3c0   : > { %v1274_v50 = vmul.f32 %v3588_v49, %v1273_v46  ;;  %v3590_v55 = vpop.eup %3589 }
 0x3c1   : > { %v1277_v57 = vsub.f32 1.0, %v3590_v55  ;;  %v1279_v15 = vmul.f32 %v3590_v55, %v4419_v14  ;;  %v1486_v55 = vpop.permute.xlu1 %1485 }
 0x3c2   : > { %v1275_v53 = vadd.f32 %v1274_v50, %v1117_v51 }
 0x3c4   : > { %3591 = vtanh.f32 %v1275_v53  ;;  %v1479_v53 = vpop.permute.xlu0 %1478 }
 0x3ce   : > { %v3592_v58 = vpop.eup %3591 }
 0x3cf   : > { %v1278_v60 = vmul.f32 %v3592_v58, %v1277_v57 }
 0x3d1   : > { %v1280_v61 = vadd.f32 %v1279_v15, %v1278_v60  ;;  %v1497_v15 = vld [vmem:[%s1496_s18] sm:$0xff] }
 0x3d3   : > { %v1290_v4 = vmul.f32 %v1288_v62, %v1280_v61 }
 0x3d5   : > { %v4462_v5 = vadd.f32 %v1297_v3, %v1290_v4  ;;  %v1498_v3 = vld [vmem:[%s1496_s18 + $0x8] sm:$0xff] }
 0x3d7   : > { %1374 = vmatmul.mubr.f32.vlgmr.msra.gmra.mrb[22].mxu0 %v4462_v5  ;;  %2831 = vmatmul.mubr.f32.vlgmr.msra.gmra.mrb[14].mxu1 %v4462_v5  ;;  %v1488_v58 = vmul.f32 %v1486_v55, %v4462_v5 }
 0x3d8   : > { %3264 = vmatpush1.bf16.msra.mxu0 %v4120_v19  ;;  %3295 = vmatpush3.bf16.msra.mxu1 %v4153_v38 }
 0x3d9   : > { %3266 = vmatprep.subr.bf16.mxu0 %v4123_v21  ;;  %3296 = vmatprep.subr.bf16.mxu1 %v3812_v37 }
 0x3da   : > { %1564 = vmatprep.mubr.f32.mxu0 %v3810_v0  ;;  %2865 = vmatprep.mubr.msk.f32.mxu1 %vm3813_vm2, %v3810_v0 }
 0x3dc   : > { %3268 = vmatpush1.bf16.msra.mxu0 %v4140_v30  ;;  %3298 = vmatpush3.bf16.msra.mxu1 %v4170_v48 }
 0x3dd   : > { %3270 = vmatprep.subr.bf16.mxu0 %v4146_v32  ;;  %3299 = vmatprep.subr.bf16.mxu1 %v3812_v37 }
 0x3e0   : > { %3272 = vmatpush1.bf16.msra.mxu0 %v4160_v42  ;;  %3301 = vmatpush3.bf16.msra.mxu1 %v4189_v59 }
 0x3e1   : > { %3274 = vmatprep.subr.bf16.mxu0 %v4163_v43  ;;  %3302 = vmatprep.subr.bf16.mxu1 %v3812_v37 }
 0x3e4   : > { %3276 = vmatpush1.bf16.msra.mxu0 %v4178_v52  ;;  %3304 = vmatpush3.bf16.msra.mxu1 %v4213_v9 }
 0x3e5   : > { %3278 = vmatprep.subr.bf16.mxu0 %v4181_v54  ;;  %3305 = vmatprep.subr.bf16.mxu1 %v3812_v37 }
 0x3e8   : > { %3280 = vmatpush1.bf16.msra.mxu0 %v4198_v63  ;;  %3307 = vmatpush3.bf16.msra.mxu1 %v4239_v24 }
 0x3e9   : > { %3282 = vmatprep.subr.bf16.mxu0 %v4201_v2  ;;  %3308 = vmatprep.subr.bf16.mxu1 %v3812_v37 }
 0x3ec   : > { %3284 = vmatpush1.bf16.msra.mxu0 %v4220_v12  ;;  %3310 = vmatpush3.bf16.msra.mxu1 %v4262_v36 }
 0x3ed   : > { %3286 = vmatprep.subr.bf16.mxu0 %v4230_v16  ;;  %3311 = vmatprep.subr.bf16.mxu1 %v3812_v37 }
 0x3f0   : > { %3288 = vmatpush1.bf16.msra.mxu0 %v4252_v29  ;;  %3313 = vmatpush3.bf16.msra.mxu1 %v4278_v47 }
 0x3f1   : > { %3290 = vmatprep.subr.bf16.mxu0 %v4255_v33  ;;  %3314 = vmatprep.subr.bf16.mxu1 %v3812_v37 }
 0x3f4   : > { %3292 = vmatpush1.bf16.msra.mxu0 %v4271_v45  ;;  %3316 = vmatpush3.bf16.msra.mxu1 %v4291_v56 }
 0x3f5   : > { %3318 = vmatprep.subr.bf16.mxu0 %v4114_v13  ;;  %3349 = vmatprep.subr.bf16.mxu1 %v3812_v37 }
 0x4aa   : > { %v1375_v26 = vpop.f32.mrb[22].mxu0  ;;  %v1446_v7 = vpop.f32.mrb[14].mxu1 }
 0x4ab   : > { %v1450_v8 = vadd.f32 %v1375_v26, %v1306_v6  ;;  %v1377_v10 = vpop.f32.mrb[23].mxu0  ;;  %v2832_v11 = vpop.f32.mrb[15].mxu1  ;;  %v1464_v34 = vadd.f32 %v4373_v1, %v1446_v7 }
 0x4ac   : > { %v1457_v20 = vadd.f32 %v1377_v10, %v1307_v18 }
 0x4ad   : > { %v2437_v14 = vmul.f32 -1.442695, %v1450_v8 }
 0x4ae   : > { %v2438_v22 = vmul.f32 -1.442695, %v1457_v20 }
 0x4af   : > { %3593 = vpow2.f32 %v2437_v14 }
 0x4b0   : > { %3595 = vpow2.f32 %v2438_v22 }
 0x4b9   : > { %v3594_v23 = vpop.eup %3593 }
 0x4ba   : > { %v1454_v25 = vadd.f32 1.0, %v3594_v23  ;;  %v3596_v28 = vpop.eup %3595  ;;  %v1499_v23 = vld [vmem:[%s1496_s18 + $0x10] sm:$0xff]  ;;  %s2419_s18 = sshll.u32 %s4044_s20, 3 }
 0x4bb   : > { %v1461_v31 = vadd.f32 1.0, %v3596_v28  ;;  %s345_s19 = scalar_lea.vmem [#allocation9], %s2419_s18 }
 0x4bc   : > { %3597 = vrcp.f32 %v1454_v25  ;;  %s2272_s7 = sshll.u32 %s345_s19, 4  ;;  %s4642_s7 = int_to_ptr.vmem [resolvable:$true] %s2272_s7 }
 0x4bd   : > { %3599 = vrcp.f32 %v1461_v31  ;;  %s3731_s15 = scalar_lea.vmem %s4642_s7, 128  ;;  %p3738_p3 = scmp.lt.s32.totalorder %s4642_s7, %s3736_s2 }
 0x4be   : > { %p3732_p12 = scmp.ne.s32.totalorder %s4642_s7, %s3731_s15 }
 0x4c0   : > { %p3733_p6 = pnand %p3732_p12, %p4715_p2 }
 0x4c2   : > { %p3734_p13 = pneg %p3733_p6 }
 0x4c6   : > { %v3598_v35 = vpop.eup %3597 }
 0x4c7   : > { %v1465_v39 = vmul.f32 %v3598_v35, %v1464_v34  ;;  %v3600_v41 = vpop.eup %3599 }
 0x4c8   : > { %v1468_v44 = vsub.f32 1.0, %v3600_v41  ;;  %v1470_v50 = vmul.f32 %v3600_v41, %v4462_v5  ;;  %v1677_v41 = vpop.permute.xlu1 %1676 }
 0x4c9   : > { %v1466_v27 = vadd.f32 %v1465_v39, %v1308_v40 }
 0x4cb   : > { %3601 = vtanh.f32 %v1466_v27  ;;  %v1670_v27 = vpop.permute.xlu0 %1669 }
 0x4d5   : > { %v3602_v46 = vpop.eup %3601 }
 0x4d6   : > { %v1469_v49 = vmul.f32 %v3602_v46, %v1468_v44 }
 0x4d8   : > { %v1471_v51 = vadd.f32 %v1470_v50, %v1469_v49  ;;  %v1689_v50 = vld [vmem:[%s1688_s27] sm:$0xff] }
 0x4da   : > { %v1481_v57 = vmul.f32 %v1479_v53, %v1471_v51 }
 0x4dc   : > { %v4505_v60 = vadd.f32 %v1488_v58, %v1481_v57 }
 0x4de   : > { %1565 = vmatmul.mubr.f32.vlgmr.msra.gmra.mrb[24].mxu0 %v4505_v60  ;;  %2866 = vmatmul.mubr.f32.vlgmr.msra.gmra.mrb[16].mxu1 %v4505_v60  ;;  %v1679_v46 = vmul.f32 %v1677_v41, %v4505_v60 }
 0x4df   : > { %3320 = vmatpush1.bf16.msra.mxu0 %v4120_v19  ;;  %3351 = vmatpush3.bf16.msra.mxu1 %v4153_v38 }
 0x4e0   : > { %3322 = vmatprep.subr.bf16.mxu0 %v4123_v21  ;;  %3352 = vmatprep.subr.bf16.mxu1 %v3812_v37 }
 0x4e1   : > { %1756 = vmatprep.mubr.f32.mxu0 %v3810_v0  ;;  %2900 = vmatprep.mubr.msk.f32.mxu1 %vm3813_vm2, %v3810_v0 }
 0x4e3   : > { %3324 = vmatpush1.bf16.msra.mxu0 %v4140_v30  ;;  %3354 = vmatpush3.bf16.msra.mxu1 %v4170_v48 }
 0x4e4   : > { %3326 = vmatprep.subr.bf16.mxu0 %v4146_v32  ;;  %3355 = vmatprep.subr.bf16.mxu1 %v3812_v37 }
 0x4e7   : > { %3328 = vmatpush1.bf16.msra.mxu0 %v4160_v42  ;;  %3357 = vmatpush3.bf16.msra.mxu1 %v4189_v59 }
 0x4e8   : > { %3330 = vmatprep.subr.bf16.mxu0 %v4163_v43  ;;  %3358 = vmatprep.subr.bf16.mxu1 %v3812_v37 }
 0x4eb   : > { %3332 = vmatpush1.bf16.msra.mxu0 %v4178_v52  ;;  %3360 = vmatpush3.bf16.msra.mxu1 %v4213_v9 }
 0x4ec   : > { %3334 = vmatprep.subr.bf16.mxu0 %v4181_v54  ;;  %3361 = vmatprep.subr.bf16.mxu1 %v3812_v37 }
 0x4ef   : > { %3336 = vmatpush1.bf16.msra.mxu0 %v4198_v63  ;;  %3363 = vmatpush3.bf16.msra.mxu1 %v4239_v24 }
 0x4f0   : > { %3338 = vmatprep.subr.bf16.mxu0 %v4201_v2  ;;  %3364 = vmatprep.subr.bf16.mxu1 %v3812_v37 }
 0x4f3   : > { %3340 = vmatpush1.bf16.msra.mxu0 %v4220_v12  ;;  %3366 = vmatpush3.bf16.msra.mxu1 %v4262_v36 }
 0x4f4   : > { %3342 = vmatprep.subr.bf16.mxu0 %v4230_v16  ;;  %3367 = vmatprep.subr.bf16.mxu1 %v3812_v37 }
 0x4f7   : > { %3344 = vmatpush1.bf16.msra.mxu0 %v4252_v29  ;;  %3369 = vmatpush3.bf16.msra.mxu1 %v4278_v47 }
 0x4f8   : > { %3346 = vmatprep.subr.bf16.mxu0 %v4255_v33  ;;  %3370 = vmatprep.subr.bf16.mxu1 %v3812_v37 }
 0x4fb   : > { %3348 = vmatpush1.bf16.msra.mxu0 %v4271_v45  ;;  %3372 = vmatpush3.bf16.msra.mxu1 %v4291_v56 }
 0x4fc   : > { %3374 = vmatprep.subr.bf16.mxu0 %v4114_v13  ;;  %3405 = vmatprep.subr.bf16.mxu1 %v3812_v37 }
 0x5b1   : > { %v1566_v61 = vpop.f32.mrb[24].mxu0  ;;  %v1637_v62 = vpop.f32.mrb[16].mxu1 }
 0x5b2   : > { %v1641_v17 = vadd.f32 %v1566_v61, %v1497_v15  ;;  %v1568_v4 = vpop.f32.mrb[25].mxu0  ;;  %v2867_v5 = vpop.f32.mrb[17].mxu1  ;;  %v1655_v18 = vadd.f32 %v4373_v1, %v1637_v62  ;;  %v1690_v15 = vld [vmem:[%s1688_s27 + $0x8] sm:$0xff] }
 0x5b3   : > { %v1648_v6 = vadd.f32 %v1568_v4, %v1498_v3 }
 0x5b4   : > { %v2442_v26 = vmul.f32 -1.442695, %v1641_v17 }
 0x5b5   : > { %v2443_v7 = vmul.f32 -1.442695, %v1648_v6 }
 0x5b6   : > { %3603 = vpow2.f32 %v2442_v26 }
 0x5b7   : > { %3605 = vpow2.f32 %v2443_v7  ;;  %v1691_v7 = vld [vmem:[%s1688_s27 + $0x10] sm:$0xff] }
 0x5c0   : > { %v3604_v8 = vpop.eup %3603 }
 0x5c1   : > { %v1645_v10 = vadd.f32 1.0, %v3604_v8  ;;  %v3606_v11 = vpop.eup %3605 }
 0x5c2   : > { %v1652_v14 = vadd.f32 1.0, %v3606_v11 }
 0x5c3   : > { %3607 = vrcp.f32 %v1645_v10 }
 0x5c4   : > { %3609 = vrcp.f32 %v1652_v14 }
 0x5cd   : > { %v3608_v20 = vpop.eup %3607 }
 0x5ce   : > { %v1656_v22 = vmul.f32 %v3608_v20, %v1655_v18  ;;  %v3610_v28 = vpop.eup %3609 }
 0x5cf   : > { %v1659_v31 = vsub.f32 1.0, %v3610_v28  ;;  %v1661_v39 = vmul.f32 %v3610_v28, %v4505_v60 }
 0x5d0   : > { %v1657_v25 = vadd.f32 %v1656_v22, %v1499_v23  ;;  %v1862_v23 = vpop.permute.xlu0 %1861 }
 0x5d2   : > { %3611 = vtanh.f32 %v1657_v25  ;;  %v1869_v25 = vpop.permute.xlu1 %1868 }
 0x5dc   : > { %v3612_v34 = vpop.eup %3611 }
 0x5dd   : > { %v1660_v35 = vmul.f32 %v3612_v34, %v1659_v31 }
 0x5df   : > { %v1662_v40 = vadd.f32 %v1661_v39, %v1660_v35  ;;  %v2054_v35 = vpop.permute.xlu0 %2053  ;;  %v2061_v39 = vpop.permute.xlu1 %2060 }
 0x5e1   : > { %v1672_v44 = vmul.f32 %v1670_v27, %v1662_v40 }
 0x5e3   : > { %v4549_v49 = vadd.f32 %v1679_v46, %v1672_v44  ;;  %v2073_v44 = vld [vmem:[%s2072_s26] sm:$0xff] }
 0x5e5   : > { %1757 = vmatmul.mubr.f32.vlgmr.msra.gmra.mrb[26].mxu0 %v4549_v49  ;;  %2901 = vmatmul.mubr.f32.vlgmr.msra.gmra.mrb[18].mxu1 %v4549_v49  ;;  %v1871_v31 = vmul.f32 %v1869_v25, %v4549_v49 }
 0x5e6   : > { %3376 = vmatpush1.bf16.msra.mxu0 %v4120_v19  ;;  %3407 = vmatpush3.bf16.msra.mxu1 %v4153_v38 }
 0x5e7   : > { %3378 = vmatprep.subr.bf16.mxu0 %v4123_v21  ;;  %3408 = vmatprep.subr.bf16.mxu1 %v3812_v37 }
 0x5e8   : > { %1948 = vmatprep.mubr.f32.mxu0 %v3810_v0  ;;  %2935 = vmatprep.mubr.msk.f32.mxu1 %vm3813_vm2, %v3810_v0 }
 0x5ea   : > { %3380 = vmatpush1.bf16.msra.mxu0 %v4140_v30  ;;  %3410 = vmatpush3.bf16.msra.mxu1 %v4170_v48 }
 0x5eb   : > { %3382 = vmatprep.subr.bf16.mxu0 %v4146_v32  ;;  %3411 = vmatprep.subr.bf16.mxu1 %v3812_v37 }
 0x5ee   : > { %3384 = vmatpush1.bf16.msra.mxu0 %v4160_v42  ;;  %3413 = vmatpush3.bf16.msra.mxu1 %v4189_v59 }
 0x5ef   : > { %3386 = vmatprep.subr.bf16.mxu0 %v4163_v43  ;;  %3414 = vmatprep.subr.bf16.mxu1 %v3812_v37 }
 0x5f2   : > { %3388 = vmatpush1.bf16.msra.mxu0 %v4178_v52  ;;  %3416 = vmatpush3.bf16.msra.mxu1 %v4213_v9 }
 0x5f3   : > { %3390 = vmatprep.subr.bf16.mxu0 %v4181_v54  ;;  %3417 = vmatprep.subr.bf16.mxu1 %v3812_v37 }
 0x5f6   : > { %3392 = vmatpush1.bf16.msra.mxu0 %v4198_v63  ;;  %3419 = vmatpush3.bf16.msra.mxu1 %v4239_v24 }
 0x5f7   : > { %3394 = vmatprep.subr.bf16.mxu0 %v4201_v2  ;;  %3420 = vmatprep.subr.bf16.mxu1 %v3812_v37 }
 0x5fa   : > { %3396 = vmatpush1.bf16.msra.mxu0 %v4220_v12  ;;  %3422 = vmatpush3.bf16.msra.mxu1 %v4262_v36 }
 0x5fb   : > { %3398 = vmatprep.subr.bf16.mxu0 %v4230_v16  ;;  %3423 = vmatprep.subr.bf16.mxu1 %v3812_v37 }
 0x5fe   : > { %3400 = vmatpush1.bf16.msra.mxu0 %v4252_v29  ;;  %3425 = vmatpush3.bf16.msra.mxu1 %v4278_v47 }
 0x5ff   : > { %3402 = vmatprep.subr.bf16.mxu0 %v4255_v33  ;;  %3426 = vmatprep.subr.bf16.mxu1 %v3812_v37 }
 0x602   : > { %3404 = vmatpush1.bf16.msra.mxu0 %v4271_v45  ;;  %3428 = vmatpush3.bf16.msra.mxu1 %v4291_v56 }
 0x603   : > { %3430 = vmatprep.subr.bf16.mxu0 %v4114_v13  ;;  %3461 = vmatprep.subr.bf16.mxu1 %v3812_v37 }
 0x6b8   : > { %v1758_v51 = vpop.f32.mrb[26].mxu0  ;;  %v1829_v53 = vpop.f32.mrb[18].mxu1 }
 0x6b9   : > { %v1833_v55 = vadd.f32 %v1758_v51, %v1689_v50  ;;  %v1760_v57 = vpop.f32.mrb[27].mxu0  ;;  %v2902_v58 = vpop.f32.mrb[19].mxu1  ;;  %v1847_v5 = vadd.f32 %v4373_v1, %v1829_v53 }
 0x6ba   : > { %v1840_v61 = vadd.f32 %v1760_v57, %v1690_v15  ;;  %v2074_v57 = vld [vmem:[%s2072_s26 + $0x8] sm:$0xff] }
 0x6bb   : > { %v2447_v60 = vmul.f32 -1.442695, %v1833_v55 }
 0x6bc   : > { %v2448_v62 = vmul.f32 -1.442695, %v1840_v61 }
 0x6bd   : > { %3613 = vpow2.f32 %v2447_v60 }
 0x6be   : > { %3615 = vpow2.f32 %v2448_v62 }
 0x6c7   : > { %v3614_v13 = vpop.eup %3613 }
 0x6c8   : > { %v1837_v17 = vadd.f32 1.0, %v3614_v13  ;;  %v3616_v3 = vpop.eup %3615 }
 0x6c9   : > { %v1844_v4 = vadd.f32 1.0, %v3616_v3 }
 0x6ca   : > { %3617 = vrcp.f32 %v1837_v17 }
 0x6cb   : > { %3619 = vrcp.f32 %v1844_v4 }
 0x6d4   : > { %v3618_v6 = vpop.eup %3617 }
 0x6d5   : > { %v1848_v26 = vmul.f32 %v3618_v6, %v1847_v5  ;;  %v3620_v10 = vpop.eup %3619  ;;  %v2075_v5 = vld [vmem:[%s2072_s26 + $0x10] sm:$0xff] }
 0x6d6   : > { %v1851_v11 = vsub.f32 1.0, %v3620_v10  ;;  %v1853_v20 = vmul.f32 %v3620_v10, %v4549_v49 }
 0x6d7   : > { %v1849_v8 = vadd.f32 %v1848_v26, %v1691_v7 }
 0x6d9   : > { %3621 = vtanh.f32 %v1849_v8 }
 0x6e3   : > { %v3622_v14 = vpop.eup %3621 }
 0x6e4   : > { %v1852_v18 = vmul.f32 %v3622_v14, %v1851_v11 }
 0x6e6   : > { %v1854_v22 = vadd.f32 %v1853_v20, %v1852_v18  ;;  %v2246_v18 = vpop.permute.xlu0 %2245  ;;  %v2253_v20 = vpop.permute.xlu1 %2252 }
 0x6e8   : > { %v1864_v28 = vmul.f32 %v1862_v23, %v1854_v22 }
 0x6ea   : > { %v4592_v34 = vadd.f32 %v1871_v31, %v1864_v28 }
 0x6ec   : > { %1949 = vmatmul.mubr.f32.vlgmr.msra.gmra.mrb[28].mxu0 %v4592_v34  ;;  %2936 = vmatmul.mubr.f32.vlgmr.msra.gmra.mrb[20].mxu1 %v4592_v34  ;;  %v2063_v27 = vmul.f32 %v2061_v39, %v4592_v34 }
 0x6ed   : > { %3432 = vmatpush1.bf16.msra.mxu0 %v4120_v19  ;;  %3463 = vmatpush3.bf16.msra.mxu1 %v4153_v38 }
 0x6ee   : > { %3434 = vmatprep.subr.bf16.mxu0 %v4123_v21  ;;  %3464 = vmatprep.subr.bf16.mxu1 %v3812_v37 }
 0x6ef   : > { %2140 = vmatprep.mubr.f32.mxu0 %v3810_v0  ;;  %2970 = vmatprep.mubr.msk.f32.mxu1 %vm3813_vm2, %v3810_v0  ;;  %v1881_v0 = vld [vmem:[%s1880_s30] sm:$0xff] }
 0x6f1   : > { %3436 = vmatpush1.bf16.msra.mxu0 %v4140_v30  ;;  %3466 = vmatpush3.bf16.msra.mxu1 %v4170_v48 }
 0x6f2   : > { %3438 = vmatprep.subr.bf16.mxu0 %v4146_v32  ;;  %3467 = vmatprep.subr.bf16.mxu1 %v3812_v37 }
 0x6f5   : > { %3440 = vmatpush1.bf16.msra.mxu0 %v4160_v42  ;;  %3469 = vmatpush3.bf16.msra.mxu1 %v4189_v59 }
 0x6f6   : > { %3442 = vmatprep.subr.bf16.mxu0 %v4163_v43  ;;  %3470 = vmatprep.subr.bf16.mxu1 %v3812_v37  ;;  %v1882_v43 = vld [vmem:[%s1880_s30 + $0x8] sm:$0xff] }
 0x6f9   : > { %3444 = vmatpush1.bf16.msra.mxu0 %v4178_v52  ;;  %3472 = vmatpush3.bf16.msra.mxu1 %v4213_v9 }
 0x6fa   : > { %3446 = vmatprep.subr.bf16.mxu0 %v4181_v54  ;;  %3473 = vmatprep.subr.bf16.mxu1 %v3812_v37 }
 0x6fd   : > { %3448 = vmatpush1.bf16.msra.mxu0 %v4198_v63  ;;  %3475 = vmatpush3.bf16.msra.mxu1 %v4239_v24 }
 0x6fe   : > { %3450 = vmatprep.subr.bf16.mxu0 %v4201_v2  ;;  %3476 = vmatprep.subr.bf16.mxu1 %v3812_v37 }
 0x701   : > { %3452 = vmatpush1.bf16.msra.mxu0 %v4220_v12  ;;  %3478 = vmatpush3.bf16.msra.mxu1 %v4262_v36 }
 0x702   : > { %3454 = vmatprep.subr.bf16.mxu0 %v4230_v16  ;;  %3479 = vmatprep.subr.bf16.mxu1 %v3812_v37  ;;  %v1883_v16 = vld [vmem:[%s1880_s30 + $0x10] sm:$0xff]  ;;  %s3737_s30 = scalar_lea.vmem %s3736_s2, 256 }
 0x703   : > { %p3739_p1 = scmp.lt.s32.totalorder %s3737_s30, %s3731_s15 }
 0x705   : > { %3456 = vmatpush1.bf16.msra.mxu0 %v4252_v29  ;;  %3481 = vmatpush3.bf16.msra.mxu1 %v4278_v47  ;;  %p3740_p5 = por %p3739_p1, %p3738_p3 }
 0x706   : > { %3458 = vmatprep.subr.bf16.mxu0 %v4255_v33  ;;  %3482 = vmatprep.subr.bf16.mxu1 %v3812_v37 }
 0x707   : > { %p3741_p11 = pnand %p3740_p5, %p3734_p13 }
 0x709   : > { %3460 = vmatpush1.bf16.msra.mxu0 %v4271_v45  ;;  %3484 = vmatpush3.bf16.msra.mxu1 %v4291_v56 }
 0x7bf   : > { %v1950_v19 = vpop.f32.mrb[28].mxu0  ;;  %v2021_v21 = vpop.f32.mrb[20].mxu1 }
 0x7c0   : > { %v2025_v30 = vadd.f32 %v1950_v19, %v1881_v0  ;;  %v1952_v32 = vpop.f32.mrb[29].mxu0  ;;  %v2937_v38 = vpop.f32.mrb[21].mxu1  ;;  %v2039_v2 = vadd.f32 %v4373_v1, %v2021_v21 }
 0x7c1   : > { %v2032_v48 = vadd.f32 %v1952_v32, %v1882_v43 }
 0x7c2   : > { %v2452_v42 = vmul.f32 -1.442695, %v2025_v30 }
 0x7c3   : > { %v2453_v37 = vmul.f32 -1.442695, %v2032_v48 }
 0x7c4   : > { %3623 = vpow2.f32 %v2452_v42 }
 0x7c5   : > { %3625 = vpow2.f32 %v2453_v37 }
 0x7ce   : > { %v3624_v52 = vpop.eup %3623 }
 0x7cf   : > { %v2029_v54 = vadd.f32 1.0, %v3624_v52  ;;  %v3626_v59 = vpop.eup %3625 }
 0x7d0   : > { %v2036_v63 = vadd.f32 1.0, %v3626_v59 }
 0x7d1   : > { %3627 = vrcp.f32 %v2029_v54 }
 0x7d2   : > { %3629 = vrcp.f32 %v2036_v63 }
 0x7db   : > { %v3628_v9 = vpop.eup %3627 }
 0x7dc   : > { %v2040_v12 = vmul.f32 %v3628_v9, %v2039_v2  ;;  %v3630_v29 = vpop.eup %3629 }
 0x7dd   : > { %v2043_v33 = vsub.f32 1.0, %v3630_v29  ;;  %v2045_v47 = vmul.f32 %v3630_v29, %v4592_v34 }
 0x7de   : > { %v2041_v24 = vadd.f32 %v2040_v12, %v1883_v16 }
 0x7e0   : > { %3631 = vtanh.f32 %v2041_v24 }
 0x7ea   : > { %v3632_v36 = vpop.eup %3631 }
 0x7eb   : > { %v2044_v45 = vmul.f32 %v3632_v36, %v2043_v33 }
 0x7ed   : > { %v2046_v56 = vadd.f32 %v2045_v47, %v2044_v45 }
 0x7ef   : > { %v2056_v40 = vmul.f32 %v2054_v35, %v2046_v56 }
 0x7f1   : > { %v2064_v41 = vadd.f32 %v2063_v27, %v2056_v40 }
 0x7f3   : > { %2141 = vmatmul.mubr.f32.vlgmr.msra.gmra.mrb[30].mxu0 %v2064_v41  ;;  %2971 = vmatmul.mubr.f32.vlgmr.msra.gmra.mrb[22].mxu1 %v2064_v41  ;;  %v2255_v22 = vmul.f32 %v2253_v20, %v2064_v41 }
 0x8c6   : > { %v2142_v46 = vpop.f32.mrb[30].mxu0  ;;  %v2213_v49 = vpop.f32.mrb[22].mxu1 }
 0x8c7   : > { %v2217_v50 = vadd.f32 %v2142_v46, %v2073_v44  ;;  %v2144_v51 = vpop.f32.mrb[31].mxu0  ;;  %v2972_v53 = vpop.f32.mrb[23].mxu1  ;;  %v2231_v17 = vadd.f32 %v4373_v1, %v2213_v49 }
 0x8c8   : > { %v2224_v58 = vadd.f32 %v2144_v51, %v2074_v57 }
 0x8c9   : > { %v2457_v55 = vmul.f32 -1.442695, %v2217_v50 }
 0x8ca   : > { %v2458_v60 = vmul.f32 -1.442695, %v2224_v58 }
 0x8cb   : > { %3633 = vpow2.f32 %v2457_v55 }
 0x8cc   : > { %3635 = vpow2.f32 %v2458_v60 }
 0x8d5   : > { %v3634_v15 = vpop.eup %3633 }
 0x8d6   : > { %v2221_v61 = vadd.f32 1.0, %v3634_v15  ;;  %v3636_v62 = vpop.eup %3635 }
 0x8d7   : > { %v2228_v13 = vadd.f32 1.0, %v3636_v62 }
 0x8d8   : > { %3637 = vrcp.f32 %v2221_v61 }
 0x8d9   : > { %3639 = vrcp.f32 %v2228_v13 }
 0x8e2   : > { %v3638_v3 = vpop.eup %3637 }
 0x8e3   : > { %v2232_v4 = vmul.f32 %v3638_v3, %v2231_v17  ;;  %v3640_v26 = vpop.eup %3639 }
 0x8e4   : > { %v2235_v7 = vsub.f32 1.0, %v3640_v26  ;;  %v2237_v10 = vmul.f32 %v3640_v26, %v2064_v41 }
 0x8e5   : > { %v2233_v6 = vadd.f32 %v2232_v4, %v2075_v5 }
 0x8e7   : > { %3641 = vtanh.f32 %v2233_v6 }
 0x8f1   : > { %v3642_v8 = vpop.eup %3641 }
 0x8f2   : > { %v2236_v11 = vmul.f32 %v3642_v8, %v2235_v7 }
 0x8f4   : > { %v2238_v14 = vadd.f32 %v2237_v10, %v2236_v11 }
 0x8f6   : > { %v2248_v1 = vmul.f32 %v2246_v18, %v2238_v14 }
 0x8f8   : > { %v2256_v23 = vadd.f32 %v2255_v22, %v2248_v1 }
 0x8fa   : > { %2257 = vst [vmem:[%s345_s19] sm:$0xff] %v2256_v23 }
 0x8fb   : > { %3744 = shalt.err (!%p3741_p11)
}
 0x8fc   : > { %s3745_s20 = scalar_lea.hbm %s4640_s8, 128  ;;  %s3749_s11 = scalar_lea.hbm %s4690_s6, 256 }
 0x8fd   : > { %p3746_p10 = scmp.ne.s32.totalorder %s4640_s8, %s3745_s20  ;;  %p3750_p7 = scmp.lt.u32.totalorder %s4640_s8, %s4690_s6 }
 0x8fe   : > { %p3751_p0 = scmp.lt.u32.totalorder %s3749_s11, %s3745_s20  ;;  %p3753_p12 = scmp.lt.u32.totalorder %s3745_s20, %s4640_s8 }
 0x8ff   : > { %p3747_p8 = pnand %p3746_p10, %p4715_p2 }
 0x900   : > { %p3752_p9 = por %p3751_p0, %p3750_p7 }
 0x901   : > { %p3748_p4 = pneg %p3747_p8 }
 0x902   : > { %p3754_p6 = por %p3753_p12, %p3752_p9 }
 0x904   : > { %p3755_p13 = pnand %p3754_p6, %p3748_p4 }
 0x906   : > { %3758 = shalt.err (!%p3755_p13)
}
 0x907   : > { %3499 = dma.vmem_to_hbm [thread:$0]  (%p4715_p2), %s4642_s7, 128, %s4640_s8, %s2259_s10  }
 0x908 PF: > { %s2284_s18 = sand.u32 1, %s3789_s21   ;;  %p4716_p3 = scmp.ne.s32.totalorder %s4703_s14, 0 }
 0x909   : > { %p4717_p1 = scmp.ge.s32.totalorder %s3801_s24, 2  ;;  %s2285_s3 = scalar_lea.sflag [#allocation5], %s2284_s18 }
 0x90b   : > { %p3513_p5 = pnand %p4717_p1, %p4716_p3 }
 0x90d   : > { %3784 = dma.done.wait (!%p3513_p5), %s2285_s3, 128  }
 0x90e   : > { %3786 = vsyncadd (!%p3513_p5), %s2285_s3, 4294967168  ;;  %p20_p11 = scmp.ge.s32.totalorder %s3871_s25, 4   ;;  %s4718_s21 = smov %s3793_s22 }
 0x90f   : > { %s4719_s22 = smov %s3797_s23  ;;  %s4720_s23 = smov %s3882_s28 }
 0x910   : > { %s4721_s24 = smov %s3871_s25  ;;  %22 = sbr.rel (!%p20_p11) target bundleno = 9 (0x9), region = 119 }
 0x917   :  { %2290 = vsyncpa [#allocation4], 1 }
 0x918   :  { %2292 = vsyncpa [#allocation4 + $0x1], 1 }
 0x919   :  { %2293 = vsyncpa [#allocation7], 1 }
 0x91a   :  { %2295 = vsyncpa [#allocation7 + $0x1], 1 }
 0x91b   :  { %2296 = vsyncpa [#allocation5], 1 }
 0x91c   :  { %2298 = vsyncpa [#allocation5 + $0x1], 1 }

</bundles_post_ra>
